<compile_context>
chip_gen: v7x
topology: tpu7x:2x2x1
jax: 0.10.0
libtpu: 0.0.40
codegen_flags: <defaults>
</compile_context>

<pallas_src>
import math
import functools

import jax
import jax.numpy as jnp
from jax.experimental import pallas as pl
from jax.experimental.pallas import tpu as pltpu

EPS = 1e-5          # nn.InstanceNorm2d default eps
LRELU_SLOPE = 0.2   # nn.LeakyReLU(0.2)
INV_SQRT2 = 1.0 / math.sqrt(2.0)


# ---------------------------------------------------------------------------
# Fused per-batch-item kernel (lane-packed (H, W*C) layout)
# ---------------------------------------------------------------------------
def _ada_res_block_kernel(x_ref, sty_ref, p1_ref, p2_ref, m1_ref, m2_ref, s_ref,
                          o_ref, pad1_ref, pad2_ref, *, H, W, cin, cout):
    wci = W * cin
    wco = W * cout
    inv_hw = 1.0 / float(H * W)

    x = x_ref[0].astype(jnp.float32)          # (H, W*Cin) lane-packed NHWC rows
    sty = sty_ref[0].astype(jnp.float32)      # (6, W*Cout) packed style/bias rows

    # --- shortcut branch first (shortest possible live range) ---------------
    # 1x1 conv (no bias) as a single block-diagonal matmul, pre-scaled.
    sc = jnp.dot(x, s_ref[...], preferred_element_type=jnp.float32) * INV_SQRT2

    g1 = sty[0:1, 0:wci]          # gamma1 tiled with period Cin
    b1 = sty[1:2, 0:wci]          # beta1
    g2 = sty[2:3, :]              # gamma2 tiled with period Cout
    b2 = sty[3:4, :]              # beta2
    cb1 = sty[4:5, :]             # conv1 bias tiled
    cb2 = sty[5:6, :]             # conv2 bias tiled

    def adain_lrelu(v, p_ref, gamma_t, beta_t):
        # v: (H, W*C).  p_ref[(w,c),(w',c')] = (c == c'): one matmul reduces
        # over w and broadcasts per-channel sums back to the packed lane layout.
        p = p_ref[...]
        csum = jnp.dot(v, p, preferred_element_type=jnp.float32)       # (H, W*C)
        csq = jnp.dot(v * v, p, preferred_element_type=jnp.float32)
        mean_t = jnp.sum(csum, axis=0, keepdims=True) * inv_hw         # (1, W*C)
        ex2_t = jnp.sum(csq, axis=0, keepdims=True) * inv_hw
        var_t = ex2_t - mean_t * mean_t                                # single-pass, biased
        r_t = jax.lax.rsqrt(var_t + EPS)
        y = (1.0 + gamma_t) * (v - mean_t) * r_t + beta_t
        return jnp.maximum(y, LRELU_SLOPE * y)                         # LeakyReLU(0.2)

    def conv3x3(act, pad_ref, m_ref, bias_t):
        # act: (H, K); pad_ref: (H+2, K) row-halo buffer; m_ref: (3, K, W*Cout)
        # banded row-conv matrices (W padding folded into the matrices).
        k = act.shape[1]
        zrow = jnp.zeros((1, k), jnp.float32)
        pad_ref[0:1, :] = zrow                  # zero only the 2 halo rows, every step
        pad_ref[H + 1:H + 2, :] = zrow
        pad_ref[1:H + 1, :] = act
        z = jnp.dot(pad_ref[0:H, :], m_ref[0], preferred_element_type=jnp.float32)
        z = z + jnp.dot(pad_ref[1:H + 1, :], m_ref[1], preferred_element_type=jnp.float32)
        z = z + jnp.dot(pad_ref[2:H + 2, :], m_ref[2], preferred_element_type=jnp.float32)
        return z + bias_t

    # --- residual branch -----------------------------------------------------
    act1 = adain_lrelu(x, p1_ref, g1, b1)            # (H, W*Cin)
    z1 = conv3x3(act1, pad1_ref, m1_ref, cb1)        # (H, W*Cout)
    act2 = adain_lrelu(z1, p2_ref, g2, b2)           # (H, W*Cout)
    z2 = conv3x3(act2, pad2_ref, m2_ref, cb2)        # (H, W*Cout)

    # (residual + shortcut) / sqrt(2) -- lane-dense store, minor dim = 128.
    o_ref[0] = (z2 * INV_SQRT2 + sc).astype(o_ref.dtype)


# ---------------------------------------------------------------------------
# Wrapper-side weight repacking (pure jnp, jit-compatible "layout plumbing")
# ---------------------------------------------------------------------------
def _conv_band_matrices(k_hwio, cin, cout, W):
    # k_hwio: (3, 3, cin, cout) ->  M: (3, W*cin, W*cout) with
    # M[dy, wp*cin+ci, w*cout+co] = K[dy, wp-w+1, ci, co] if |wp-w| <= 1 else 0.
    wp = jnp.arange(W)[:, None]
    w = jnp.arange(W)[None, :]
    dx = wp - w + 1                                   # (W, W)
    valid = (dx >= 0) & (dx <= 2)
    dxc = jnp.clip(dx, 0, 2)
    blocks = k_hwio[:, dxc, :, :]                     # (3, W, W, cin, cout)
    blocks = blocks * valid[None, :, :, None, None].astype(k_hwio.dtype)
    return blocks.transpose(0, 1, 3, 2, 4).reshape(3, W * cin, W * cout)


def _blockdiag_1x1(w_1x1, W):
    # (cin, cout) -> (W*cin, W*cout) block-diagonal (per-pixel channel mix).
    cin, cout = w_1x1.shape
    eye = jnp.eye(W, dtype=w_1x1.dtype)
    return (eye[:, None, :, None] * w_1x1[None, :, None, :]).reshape(W * cin, W * cout)


def _channel_reduce_mat(c, W, dtype=jnp.float32):
    # P[(w,ch), (w',ch')] = 1 if ch == ch' : reduce over w + broadcast back.
    idx = jnp.arange(W * c) % c
    return (idx[:, None] == idx[None, :]).astype(dtype)


# ---------------------------------------------------------------------------
# AdaResBlock forward (filter_wt == 0, upsample == False, shortcut conv active)
# ---------------------------------------------------------------------------
def ada_res_block_forward(x, s, p):
    # x: (N, H, W, Cin) NHWC;  s: (N, style_dim)
    N, H, W, Cin = x.shape
    Cout = p["conv1_w"].shape[-1]
    wci, wco = W * Cin, W * Cout
    assert wco % 128 == 0, "keep the output minor dim a multiple of 128 (lane-dense)"
    assert wco % Cin == 0 and wco % Cout == 0

    # TODO(synk): nearest-neighbor upsample path (upsample=True) not implemented;
    # the module here is instantiated with upsample=False.

    # Tiny style FC layers (gamma/beta) are parameter glue, kept in plain JAX.
    h1 = s @ p["fc1_w"].T + p["fc1_b"]          # (N, 2*Cin)
    gamma1, beta1 = jnp.split(h1, 2, axis=1)    # torch.chunk(dim=1)
    h2 = s @ p["fc2_w"].T + p["fc2_b"]          # (N, 2*Cout)
    gamma2, beta2 = jnp.split(h2, 2, axis=1)

    # Pack per-sample style rows + conv biases, tiled to the packed lane layout.
    def tile_c(v, c):                           # (N, c) -> (N, wco), period c
        return jnp.tile(v, (1, wco // c))
    style = jnp.stack([
        tile_c(gamma1, Cin), tile_c(beta1, Cin),
        tile_c(gamma2, Cout), tile_c(beta2, Cout),
        jnp.tile(p["conv1_b"][None, :], (N, W)),
        jnp.tile(p["conv2_b"][None, :], (N, W)),
    ], axis=1).astype(jnp.float32)              # (N, 6, wco)

    M1 = _conv_band_matrices(p["conv1_w"], Cin, Cout, W).astype(jnp.float32)   # (3, wci, wco)
    M2 = _conv_band_matrices(p["conv2_w"], Cout, Cout, W).astype(jnp.float32)  # (3, wco, wco)
    S = _blockdiag_1x1(p["conv1x1_w"], W).astype(jnp.float32)                  # (wci, wco)
    P1 = _channel_reduce_mat(Cin, W)                                           # (wci, wci)
    P2 = _channel_reduce_mat(Cout, W)                                          # (wco, wco)

    kern = functools.partial(_ada_res_block_kernel, H=H, W=W, cin=Cin, cout=Cout)
    out_flat = pl.pallas_call(
        kern,
        out_shape=jax.ShapeDtypeStruct((N, H, wco), x.dtype),
        grid=(N,),
        in_specs=[
            pl.BlockSpec((1, H, wci), lambda n: (n, 0, 0)),     # x, lane-packed rows
            pl.BlockSpec((1, 6, wco), lambda n: (n, 0, 0)),     # packed style/bias rows
            pl.BlockSpec((wci, wci), lambda n: (0, 0)),         # P1 (channel reduce mat)
            pl.BlockSpec((wco, wco), lambda n: (0, 0)),         # P2
            pl.BlockSpec((3, wci, wco), lambda n: (0, 0, 0)),   # conv1 banded weights
            pl.BlockSpec((3, wco, wco), lambda n: (0, 0, 0)),   # conv2 banded weights
            pl.BlockSpec((wci, wco), lambda n: (0, 0)),         # 1x1 shortcut (block-diag)
        ],
        out_specs=pl.BlockSpec((1, H, wco), lambda n: (n, 0, 0)),
        scratch_shapes=[
            pltpu.VMEM((H + 2, wci), jnp.float32),   # conv1 row-halo buffer
            pltpu.VMEM((H + 2, wco), jnp.float32),   # conv2 row-halo buffer
        ],
        compiler_params=pltpu.CompilerParams(
            dimension_semantics=("parallel",)),      # N=2 shards across v7x's 2 TCs
    )(x.reshape(N, H, wci), style, P1, P2, M1, M2, S)
    return out_flat.reshape(N, H, W, Cout)


# ---------------------------------------------------------------------------
# Pure-JAX reference (for correctness check)
# ---------------------------------------------------------------------------
def reference_forward(x, s, p):
    def adain(x, g, b):
        mean = jnp.mean(x, axis=(1, 2), keepdims=True)
        var = jnp.mean((x - mean) ** 2, axis=(1, 2), keepdims=True)
        xn = (x - mean) / jnp.sqrt(var + EPS)
        return (1 + g[:, None, None, :]) * xn + b[:, None, None, :]

    def lrelu(v):
        return jnp.where(v >= 0, v, LRELU_SLOPE * v)

    def conv(v, w, b):
        y = jax.lax.conv_general_dilated(
            v, w, (1, 1), "SAME",
            dimension_numbers=("NHWC", "HWIO", "NHWC"),
            precision=jax.lax.Precision.HIGHEST)
        return y + b

    h1 = s @ p["fc1_w"].T + p["fc1_b"]
    g1, b1 = jnp.split(h1, 2, axis=1)
    h2 = s @ p["fc2_w"].T + p["fc2_b"]
    g2, b2 = jnp.split(h2, 2, axis=1)

    y = lrelu(adain(x, g1, b1))
    y = conv(y, p["conv1_w"], p["conv1_b"])
    y = lrelu(adain(y, g2, b2))
    y = conv(y, p["conv2_w"], p["conv2_b"])

    w1x1 = p["conv1x1_w"].reshape(1, 1, *p["conv1x1_w"].shape)
    sc = jax.lax.conv_general_dilated(
        x, w1x1, (1, 1), "SAME",
        dimension_numbers=("NHWC", "HWIO", "NHWC"),
        precision=jax.lax.Precision.HIGHEST)
    return (y + sc) / math.sqrt(2.0)


if __name__ == "__main__":
    # small shapes consistent with the module
    N, H, W = 2, 16, 16
    dim_in, dim_out, style_dim = 4, 8, 16

    key = jax.random.PRNGKey(0)
    keys = jax.random.split(key, 10)

    params = {
        # AdaptiveInstanceNorm 1 (style_dim -> 2*dim_in), Linear stores (out,in)
        "fc1_w": 0.1 * jax.random.normal(keys[0], (2 * dim_in, style_dim), jnp.float32),
        "fc1_b": 0.1 * jax.random.normal(keys[1], (2 * dim_in,), jnp.float32),
        # conv_1: 3x3, dim_in -> dim_out, HWIO layout
        "conv1_w": 0.1 * jax.random.normal(keys[2], (3, 3, dim_in, dim_out), jnp.float32),
        "conv1_b": 0.1 * jax.random.normal(keys[3], (dim_out,), jnp.float32),
        # AdaptiveInstanceNorm 2 (style_dim -> 2*dim_out)
        "fc2_w": 0.1 * jax.random.normal(keys[4], (2 * dim_out, style_dim), jnp.float32),
        "fc2_b": 0.1 * jax.random.normal(keys[5], (2 * dim_out,), jnp.float32),
        # conv_2: 3x3, dim_out -> dim_out
        "conv2_w": 0.1 * jax.random.normal(keys[6], (3, 3, dim_out, dim_out), jnp.float32),
        "conv2_b": 0.1 * jax.random.normal(keys[7], (dim_out,), jnp.float32),
        # conv_1x1 (no bias): dim_in -> dim_out, stored as (Cin, Cout)
        "conv1x1_w": 0.1 * jax.random.normal(keys[8], (dim_in, dim_out), jnp.float32),
    }

    x = jax.random.normal(keys[9], (N, H, W, dim_in), jnp.float32)   # NHWC
    s = jax.random.normal(jax.random.PRNGKey(42), (N, style_dim), jnp.float32)

    out = ada_res_block_forward(x, s, params)
    out = jax.block_until_ready(out)

    ref = reference_forward(x, s, params)
    assert out.shape == (N, H, W, dim_out)
    assert jnp.allclose(out, ref, atol=1e-3, rtol=1e-3), \
        f"max abs err = {float(jnp.max(jnp.abs(out - ref)))}"

    print("KERNEL_OK")
</pallas_src>

<mosaic_0001>
module attributes {stable_mosaic.version = 11 : i64} {
  func.func @_ada_res_block_kernel(%arg0: i32, %arg1: memref<1x16x64xf32, #tpu.memory_space<vmem>>, %arg2: memref<1x6x128xf32, #tpu.memory_space<vmem>>, %arg3: memref<64x64xf32, #tpu.memory_space<vmem>>, %arg4: memref<128x128xf32, #tpu.memory_space<vmem>>, %arg5: memref<3x64x128xf32, #tpu.memory_space<vmem>>, %arg6: memref<3x128x128xf32, #tpu.memory_space<vmem>>, %arg7: memref<64x128xf32, #tpu.memory_space<vmem>>, %arg8: memref<1x16x128xf32, #tpu.memory_space<vmem>>, %arg9: memref<18x64xf32, #tpu.memory_space<vmem>>, %arg10: memref<18x128xf32, #tpu.memory_space<vmem>>) attributes {dimension_semantics = [#tpu.dimension_semantics<parallel>], iteration_bounds = array<i64: 2>, scalar_prefetch = 0 : i64, scratch_operands = 2 : i64, tpu.core_type = #tpu.core_type<tc>, window_params = [{transform_indices = @transform_0, window_bounds = array<i64: 1, 16, 64>}, {transform_indices = @transform_1, window_bounds = array<i64: 1, 6, 128>}, {pipeline_mode = #tpu.pipeline_mode<synchronous>, transform_indices = @transform_2, window_bounds = array<i64: 64, 64>}, {pipeline_mode = #tpu.pipeline_mode<synchronous>, transform_indices = @transform_3, window_bounds = array<i64: 128, 128>}, {pipeline_mode = #tpu.pipeline_mode<synchronous>, transform_indices = @transform_4, window_bounds = array<i64: 3, 64, 128>}, {pipeline_mode = #tpu.pipeline_mode<synchronous>, transform_indices = @transform_5, window_bounds = array<i64: 3, 128, 128>}, {pipeline_mode = #tpu.pipeline_mode<synchronous>, transform_indices = @transform_6, window_bounds = array<i64: 64, 128>}, {transform_indices = @transform_7, window_bounds = array<i64: 1, 16, 128>}]} {
    %c0 = arith.constant 0 : index
    %c0_0 = arith.constant 0 : index
    %c0_1 = arith.constant 0 : index
    %0 = vector.load %arg1[%c0, %c0_0, %c0_1] : memref<1x16x64xf32, #tpu.memory_space<vmem>>, vector<1x16x64xf32>
    %1 = vector.shape_cast %0 : vector<1x16x64xf32> to vector<16x64xf32>
    %c0_2 = arith.constant 0 : index
    %c0_3 = arith.constant 0 : index
    %c0_4 = arith.constant 0 : index
    %2 = vector.load %arg2[%c0_2, %c0_3, %c0_4] : memref<1x6x128xf32, #tpu.memory_space<vmem>>, vector<1x6x128xf32>
    %3 = vector.shape_cast %2 : vector<1x6x128xf32> to vector<6x128xf32>
    %c0_5 = arith.constant 0 : index
    %c0_6 = arith.constant 0 : index
    %4 = vector.load %arg7[%c0_5, %c0_6] : memref<64x128xf32, #tpu.memory_space<vmem>>, vector<64x128xf32>
    %cst = arith.constant dense<0.000000e+00> : vector<16x128xf32>
    %5 = tpu.matmul %1, %4, %cst {dimension_numbers = #tpu.dot_dimension_numbers<[1], [0], [0], [1], [0, 0, 1, 1], [], []>} : vector<16x64xf32>, vector<64x128xf32>, vector<16x128xf32> -> vector<16x128xf32>
    %cst_7 = arith.constant 0.707106769 : f32
    %6 = vector.broadcast %cst_7 : f32 to vector<16x128xf32>
    %7 = arith.mulf %5, %6 : vector<16x128xf32>
    %8 = vector.extract_strided_slice %3 {offsets = [0, 0], sizes = [1, 64], strides = [1, 1]} : vector<6x128xf32> to vector<1x64xf32>
    %9 = vector.extract_strided_slice %3 {offsets = [1, 0], sizes = [1, 64], strides = [1, 1]} : vector<6x128xf32> to vector<1x64xf32>
    %10 = vector.extract_strided_slice %3 {offsets = [2, 0], sizes = [1, 128], strides = [1, 1]} : vector<6x128xf32> to vector<1x128xf32>
    %11 = vector.extract_strided_slice %3 {offsets = [3, 0], sizes = [1, 128], strides = [1, 1]} : vector<6x128xf32> to vector<1x128xf32>
    %12 = vector.extract_strided_slice %3 {offsets = [4, 0], sizes = [1, 128], strides = [1, 1]} : vector<6x128xf32> to vector<1x128xf32>
    %13 = vector.extract_strided_slice %3 {offsets = [5, 0], sizes = [1, 128], strides = [1, 1]} : vector<6x128xf32> to vector<1x128xf32>
    %c0_8 = arith.constant 0 : index
    %c0_9 = arith.constant 0 : index
    %14 = vector.load %arg3[%c0_8, %c0_9] : memref<64x64xf32, #tpu.memory_space<vmem>>, vector<64x64xf32>
    %cst_10 = arith.constant dense<0.000000e+00> : vector<16x64xf32>
    %15 = tpu.matmul %1, %14, %cst_10 {dimension_numbers = #tpu.dot_dimension_numbers<[1], [0], [0], [1], [0, 0, 1, 1], [], []>} : vector<16x64xf32>, vector<64x64xf32>, vector<16x64xf32> -> vector<16x64xf32>
    %16 = arith.mulf %1, %1 : vector<16x64xf32>
    %cst_11 = arith.constant dense<0.000000e+00> : vector<16x64xf32>
    %17 = tpu.matmul %16, %14, %cst_11 {dimension_numbers = #tpu.dot_dimension_numbers<[1], [0], [0], [1], [0, 0, 1, 1], [], []>} : vector<16x64xf32>, vector<64x64xf32>, vector<16x64xf32> -> vector<16x64xf32>
    %cst_12 = arith.constant dense<0.000000e+00> : vector<64xf32>
    %18 = vector.multi_reduction <add>, %15, %cst_12 [0] : vector<16x64xf32> to vector<64xf32>
    %19 = vector.shape_cast %18 : vector<64xf32> to vector<1x64xf32>
    %cst_13 = arith.constant 3.906250e-03 : f32
    %20 = vector.broadcast %cst_13 : f32 to vector<1x64xf32>
    %21 = arith.mulf %19, %20 : vector<1x64xf32>
    %cst_14 = arith.constant dense<0.000000e+00> : vector<64xf32>
    %22 = vector.multi_reduction <add>, %17, %cst_14 [0] : vector<16x64xf32> to vector<64xf32>
    %23 = vector.shape_cast %22 : vector<64xf32> to vector<1x64xf32>
    %cst_15 = arith.constant 3.906250e-03 : f32
    %24 = vector.broadcast %cst_15 : f32 to vector<1x64xf32>
    %25 = arith.mulf %23, %24 : vector<1x64xf32>
    %26 = arith.mulf %21, %21 : vector<1x64xf32>
    %27 = arith.subf %25, %26 : vector<1x64xf32>
    %cst_16 = arith.constant 9.99999974E-6 : f32
    %28 = vector.broadcast %cst_16 : f32 to vector<1x64xf32>
    %29 = arith.addf %27, %28 : vector<1x64xf32>
    %30 = math.rsqrt %29 : vector<1x64xf32>
    %cst_17 = arith.constant 1.000000e+00 : f32
    %31 = vector.broadcast %cst_17 : f32 to vector<1x64xf32>
    %32 = arith.addf %31, %8 : vector<1x64xf32>
    %33 = vector.broadcast %21 : vector<1x64xf32> to vector<16x64xf32>
    %34 = arith.subf %1, %33 : vector<16x64xf32>
    %35 = vector.broadcast %32 : vector<1x64xf32> to vector<16x64xf32>
    %36 = arith.mulf %35, %34 : vector<16x64xf32>
    %37 = vector.broadcast %30 : vector<1x64xf32> to vector<16x64xf32>
    %38 = arith.mulf %36, %37 : vector<16x64xf32>
    %39 = vector.broadcast %9 : vector<1x64xf32> to vector<16x64xf32>
    %40 = arith.addf %38, %39 : vector<16x64xf32>
    %cst_18 = arith.constant 2.000000e-01 : f32
    %41 = vector.broadcast %cst_18 : f32 to vector<16x64xf32>
    %42 = arith.mulf %41, %40 : vector<16x64xf32>
    %43 = arith.maximumf %40, %42 : vector<16x64xf32>
    %cst_19 = arith.constant 0.000000e+00 : f32
    %44 = vector.broadcast %cst_19 : f32 to vector<1x64xf32>
    %c0_20 = arith.constant 0 : index
    %c0_21 = arith.constant 0 : index
    %45 = vector.load %arg9[%c0_20, %c0_21] : memref<18x64xf32, #tpu.memory_space<vmem>>, vector<1x64xf32>
    tpu.vector_store %arg9[%c0_20, %c0_21], %44 {strides = array<i32>} : memref<18x64xf32, #tpu.memory_space<vmem>>, vector<1x64xf32>,
    %c17 = arith.constant 17 : index
    %c0_22 = arith.constant 0 : index
    %46 = vector.load %arg9[%c17, %c0_22] : memref<18x64xf32, #tpu.memory_space<vmem>>, vector<1x64xf32>
    tpu.vector_store %arg9[%c17, %c0_22], %44 {strides = array<i32>} : memref<18x64xf32, #tpu.memory_space<vmem>>, vector<1x64xf32>,
    %c1 = arith.constant 1 : index
    %c0_23 = arith.constant 0 : index
    %47 = vector.load %arg9[%c1, %c0_23] : memref<18x64xf32, #tpu.memory_space<vmem>>, vector<16x64xf32>
    tpu.vector_store %arg9[%c1, %c0_23], %43 {strides = array<i32>} : memref<18x64xf32, #tpu.memory_space<vmem>>, vector<16x64xf32>,
    %c0_24 = arith.constant 0 : index
    %c0_25 = arith.constant 0 : index
    %48 = vector.load %arg9[%c0_24, %c0_25] : memref<18x64xf32, #tpu.memory_space<vmem>>, vector<16x64xf32>
    %c0_26 = arith.constant 0 : index
    %c0_27 = arith.constant 0 : index
    %c0_28 = arith.constant 0 : index
    %49 = vector.load %arg5[%c0_26, %c0_27, %c0_28] : memref<3x64x128xf32, #tpu.memory_space<vmem>>, vector<1x64x128xf32>
    %50 = vector.shape_cast %49 : vector<1x64x128xf32> to vector<64x128xf32>
    %cst_29 = arith.constant dense<0.000000e+00> : vector<16x128xf32>
    %51 = tpu.matmul %48, %50, %cst_29 {dimension_numbers = #tpu.dot_dimension_numbers<[1], [0], [0], [1], [0, 0, 1, 1], [], []>} : vector<16x64xf32>, vector<64x128xf32>, vector<16x128xf32> -> vector<16x128xf32>
    %c1_30 = arith.constant 1 : index
    %c0_31 = arith.constant 0 : index
    %52 = vector.load %arg9[%c1_30, %c0_31] : memref<18x64xf32, #tpu.memory_space<vmem>>, vector<16x64xf32>
    %c1_32 = arith.constant 1 : index
    %c0_33 = arith.constant 0 : index
    %c0_34 = arith.constant 0 : index
    %53 = vector.load %arg5[%c1_32, %c0_33, %c0_34] : memref<3x64x128xf32, #tpu.memory_space<vmem>>, vector<1x64x128xf32>
    %54 = vector.shape_cast %53 : vector<1x64x128xf32> to vector<64x128xf32>
    %cst_35 = arith.constant dense<0.000000e+00> : vector<16x128xf32>
    %55 = tpu.matmul %52, %54, %cst_35 {dimension_numbers = #tpu.dot_dimension_numbers<[1], [0], [0], [1], [0, 0, 1, 1], [], []>} : vector<16x64xf32>, vector<64x128xf32>, vector<16x128xf32> -> vector<16x128xf32>
    %56 = arith.addf %51, %55 : vector<16x128xf32>
    %c2 = arith.constant 2 : index
    %c0_36 = arith.constant 0 : index
    %57 = vector.load %arg9[%c2, %c0_36] : memref<18x64xf32, #tpu.memory_space<vmem>>, vector<16x64xf32>
    %c2_37 = arith.constant 2 : index
    %c0_38 = arith.constant 0 : index
    %c0_39 = arith.constant 0 : index
    %58 = vector.load %arg5[%c2_37, %c0_38, %c0_39] : memref<3x64x128xf32, #tpu.memory_space<vmem>>, vector<1x64x128xf32>
    %59 = vector.shape_cast %58 : vector<1x64x128xf32> to vector<64x128xf32>
    %cst_40 = arith.constant dense<0.000000e+00> : vector<16x128xf32>
    %60 = tpu.matmul %57, %59, %cst_40 {dimension_numbers = #tpu.dot_dimension_numbers<[1], [0], [0], [1], [0, 0, 1, 1], [], []>} : vector<16x64xf32>, vector<64x128xf32>, vector<16x128xf32> -> vector<16x128xf32>
    %61 = arith.addf %56, %60 : vector<16x128xf32>
    %62 = vector.broadcast %12 : vector<1x128xf32> to vector<16x128xf32>
    %63 = arith.addf %61, %62 : vector<16x128xf32>
    %c0_41 = arith.constant 0 : index
    %c0_42 = arith.constant 0 : index
    %64 = vector.load %arg4[%c0_41, %c0_42] : memref<128x128xf32, #tpu.memory_space<vmem>>, vector<128x128xf32>
    %cst_43 = arith.constant dense<0.000000e+00> : vector<16x128xf32>
    %65 = tpu.matmul %63, %64, %cst_43 {dimension_numbers = #tpu.dot_dimension_numbers<[1], [0], [0], [1], [0, 0, 1, 1], [], []>} : vector<16x128xf32>, vector<128x128xf32>, vector<16x128xf32> -> vector<16x128xf32>
    %66 = arith.mulf %63, %63 : vector<16x128xf32>
    %cst_44 = arith.constant dense<0.000000e+00> : vector<16x128xf32>
    %67 = tpu.matmul %66, %64, %cst_44 {dimension_numbers = #tpu.dot_dimension_numbers<[1], [0], [0], [1], [0, 0, 1, 1], [], []>} : vector<16x128xf32>, vector<128x128xf32>, vector<16x128xf32> -> vector<16x128xf32>
    %cst_45 = arith.constant dense<0.000000e+00> : vector<128xf32>
    %68 = vector.multi_reduction <add>, %65, %cst_45 [0] : vector<16x128xf32> to vector<128xf32>
    %69 = vector.shape_cast %68 : vector<128xf32> to vector<1x128xf32>
    %cst_46 = arith.constant 3.906250e-03 : f32
    %70 = vector.broadcast %cst_46 : f32 to vector<1x128xf32>
    %71 = arith.mulf %69, %70 : vector<1x128xf32>
    %cst_47 = arith.constant dense<0.000000e+00> : vector<128xf32>
    %72 = vector.multi_reduction <add>, %67, %cst_47 [0] : vector<16x128xf32> to vector<128xf32>
    %73 = vector.shape_cast %72 : vector<128xf32> to vector<1x128xf32>
    %cst_48 = arith.constant 3.906250e-03 : f32
    %74 = vector.broadcast %cst_48 : f32 to vector<1x128xf32>
    %75 = arith.mulf %73, %74 : vector<1x128xf32>
    %76 = arith.mulf %71, %71 : vector<1x128xf32>
    %77 = arith.subf %75, %76 : vector<1x128xf32>
    %cst_49 = arith.constant 9.99999974E-6 : f32
    %78 = vector.broadcast %cst_49 : f32 to vector<1x128xf32>
    %79 = arith.addf %77, %78 : vector<1x128xf32>
    %80 = math.rsqrt %79 : vector<1x128xf32>
    %cst_50 = arith.constant 1.000000e+00 : f32
    %81 = vector.broadcast %cst_50 : f32 to vector<1x128xf32>
    %82 = arith.addf %81, %10 : vector<1x128xf32>
    %83 = vector.broadcast %71 : vector<1x128xf32> to vector<16x128xf32>
    %84 = arith.subf %63, %83 : vector<16x128xf32>
    %85 = vector.broadcast %82 : vector<1x128xf32> to vector<16x128xf32>
    %86 = arith.mulf %85, %84 : vector<16x128xf32>
    %87 = vector.broadcast %80 : vector<1x128xf32> to vector<16x128xf32>
    %88 = arith.mulf %86, %87 : vector<16x128xf32>
    %89 = vector.broadcast %11 : vector<1x128xf32> to vector<16x128xf32>
    %90 = arith.addf %88, %89 : vector<16x128xf32>
    %cst_51 = arith.constant 2.000000e-01 : f32
    %91 = vector.broadcast %cst_51 : f32 to vector<16x128xf32>
    %92 = arith.mulf %91, %90 : vector<16x128xf32>
    %93 = arith.maximumf %90, %92 : vector<16x128xf32>
    %cst_52 = arith.constant 0.000000e+00 : f32
    %94 = vector.broadcast %cst_52 : f32 to vector<1x128xf32>
    %c0_53 = arith.constant 0 : index
    %c0_54 = arith.constant 0 : index
    %95 = vector.load %arg10[%c0_53, %c0_54] : memref<18x128xf32, #tpu.memory_space<vmem>>, vector<1x128xf32>
    tpu.vector_store %arg10[%c0_53, %c0_54], %94 {strides = array<i32>} : memref<18x128xf32, #tpu.memory_space<vmem>>, vector<1x128xf32>,
    %c17_55 = arith.constant 17 : index
    %c0_56 = arith.constant 0 : index
    %96 = vector.load %arg10[%c17_55, %c0_56] : memref<18x128xf32, #tpu.memory_space<vmem>>, vector<1x128xf32>
    tpu.vector_store %arg10[%c17_55, %c0_56], %94 {strides = array<i32>} : memref<18x128xf32, #tpu.memory_space<vmem>>, vector<1x128xf32>,
    %c1_57 = arith.constant 1 : index
    %c0_58 = arith.constant 0 : index
    %97 = vector.load %arg10[%c1_57, %c0_58] : memref<18x128xf32, #tpu.memory_space<vmem>>, vector<16x128xf32>
    tpu.vector_store %arg10[%c1_57, %c0_58], %93 {strides = array<i32>} : memref<18x128xf32, #tpu.memory_space<vmem>>, vector<16x128xf32>,
    %c0_59 = arith.constant 0 : index
    %c0_60 = arith.constant 0 : index
    %98 = vector.load %arg10[%c0_59, %c0_60] : memref<18x128xf32, #tpu.memory_space<vmem>>, vector<16x128xf32>
    %c0_61 = arith.constant 0 : index
    %c0_62 = arith.constant 0 : index
    %c0_63 = arith.constant 0 : index
    %99 = vector.load %arg6[%c0_61, %c0_62, %c0_63] : memref<3x128x128xf32, #tpu.memory_space<vmem>>, vector<1x128x128xf32>
    %100 = vector.shape_cast %99 : vector<1x128x128xf32> to vector<128x128xf32>
    %cst_64 = arith.constant dense<0.000000e+00> : vector<16x128xf32>
    %101 = tpu.matmul %98, %100, %cst_64 {dimension_numbers = #tpu.dot_dimension_numbers<[1], [0], [0], [1], [0, 0, 1, 1], [], []>} : vector<16x128xf32>, vector<128x128xf32>, vector<16x128xf32> -> vector<16x128xf32>
    %c1_65 = arith.constant 1 : index
    %c0_66 = arith.constant 0 : index
    %102 = vector.load %arg10[%c1_65, %c0_66] : memref<18x128xf32, #tpu.memory_space<vmem>>, vector<16x128xf32>
    %c1_67 = arith.constant 1 : index
    %c0_68 = arith.constant 0 : index
    %c0_69 = arith.constant 0 : index
    %103 = vector.load %arg6[%c1_67, %c0_68, %c0_69] : memref<3x128x128xf32, #tpu.memory_space<vmem>>, vector<1x128x128xf32>
    %104 = vector.shape_cast %103 : vector<1x128x128xf32> to vector<128x128xf32>
    %cst_70 = arith.constant dense<0.000000e+00> : vector<16x128xf32>
    %105 = tpu.matmul %102, %104, %cst_70 {dimension_numbers = #tpu.dot_dimension_numbers<[1], [0], [0], [1], [0, 0, 1, 1], [], []>} : vector<16x128xf32>, vector<128x128xf32>, vector<16x128xf32> -> vector<16x128xf32>
    %106 = arith.addf %101, %105 : vector<16x128xf32>
    %c2_71 = arith.constant 2 : index
    %c0_72 = arith.constant 0 : index
    %107 = vector.load %arg10[%c2_71, %c0_72] : memref<18x128xf32, #tpu.memory_space<vmem>>, vector<16x128xf32>
    %c2_73 = arith.constant 2 : index
    %c0_74 = arith.constant 0 : index
    %c0_75 = arith.constant 0 : index
    %108 = vector.load %arg6[%c2_73, %c0_74, %c0_75] : memref<3x128x128xf32, #tpu.memory_space<vmem>>, vector<1x128x128xf32>
    %109 = vector.shape_cast %108 : vector<1x128x128xf32> to vector<128x128xf32>
    %cst_76 = arith.constant dense<0.000000e+00> : vector<16x128xf32>
    %110 = tpu.matmul %107, %109, %cst_76 {dimension_numbers = #tpu.dot_dimension_numbers<[1], [0], [0], [1], [0, 0, 1, 1], [], []>} : vector<16x128xf32>, vector<128x128xf32>, vector<16x128xf32> -> vector<16x128xf32>
    %111 = arith.addf %106, %110 : vector<16x128xf32>
    %112 = vector.broadcast %13 : vector<1x128xf32> to vector<16x128xf32>
    %113 = arith.addf %111, %112 : vector<16x128xf32>
    %cst_77 = arith.constant 0.707106769 : f32
    %114 = vector.broadcast %cst_77 : f32 to vector<16x128xf32>
    %115 = arith.mulf %113, %114 : vector<16x128xf32>
    %116 = arith.addf %115, %7 : vector<16x128xf32>
    %c0_78 = arith.constant 0 : index
    %c0_79 = arith.constant 0 : index
    %c0_80 = arith.constant 0 : index
    %117 = vector.load %arg8[%c0_78, %c0_79, %c0_80] : memref<1x16x128xf32, #tpu.memory_space<vmem>>, vector<1x16x128xf32>
    %118 = vector.shape_cast %117 : vector<1x16x128xf32> to vector<16x128xf32>
    %119 = vector.shape_cast %116 : vector<16x128xf32> to vector<1x16x128xf32>
    tpu.vector_store %arg8[%c0_78, %c0_79, %c0_80], %119 {strides = array<i32>} : memref<1x16x128xf32, #tpu.memory_space<vmem>>, vector<1x16x128xf32>,
    return
  }
  func.func @transform_0(%arg0: i32) -> (i32, i32, i32) {
    %c0_i32 = arith.constant 0 : i32
    %c0_i32_0 = arith.constant 0 : i32
    %c0_i32_1 = arith.constant 0 : i32
    return %arg0, %c0_i32, %c0_i32_0 : i32, i32, i32
  }
  func.func @transform_1(%arg0: i32) -> (i32, i32, i32) {
    %c0_i32 = arith.constant 0 : i32
    %c0_i32_0 = arith.constant 0 : i32
    %c0_i32_1 = arith.constant 0 : i32
    return %arg0, %c0_i32, %c0_i32_0 : i32, i32, i32
  }
  func.func @transform_2(%arg0: i32) -> (i32, i32) {
    %c0_i32 = arith.constant 0 : i32
    %c0_i32_0 = arith.constant 0 : i32
    %c0_i32_1 = arith.constant 0 : i32
    return %c0_i32, %c0_i32_0 : i32, i32
  }
  func.func @transform_3(%arg0: i32) -> (i32, i32) {
    %c0_i32 = arith.constant 0 : i32
    %c0_i32_0 = arith.constant 0 : i32
    %c0_i32_1 = arith.constant 0 : i32
    return %c0_i32, %c0_i32_0 : i32, i32
  }
  func.func @transform_4(%arg0: i32) -> (i32, i32, i32) {
    %c0_i32 = arith.constant 0 : i32
    %c0_i32_0 = arith.constant 0 : i32
    %c0_i32_1 = arith.constant 0 : i32
    %c0_i32_2 = arith.constant 0 : i32
    return %c0_i32, %c0_i32_0, %c0_i32_1 : i32, i32, i32
  }
  func.func @transform_5(%arg0: i32) -> (i32, i32, i32) {
    %c0_i32 = arith.constant 0 : i32
    %c0_i32_0 = arith.constant 0 : i32
    %c0_i32_1 = arith.constant 0 : i32
    %c0_i32_2 = arith.constant 0 : i32
    return %c0_i32, %c0_i32_0, %c0_i32_1 : i32, i32, i32
  }
  func.func @transform_6(%arg0: i32) -> (i32, i32) {
    %c0_i32 = arith.constant 0 : i32
    %c0_i32_0 = arith.constant 0 : i32
    %c0_i32_1 = arith.constant 0 : i32
    return %c0_i32, %c0_i32_0 : i32, i32
  }
  func.func @transform_7(%arg0: i32) -> (i32, i32, i32) {
    %c0_i32 = arith.constant 0 : i32
    %c0_i32_0 = arith.constant 0 : i32
    %c0_i32_1 = arith.constant 0 : i32
    return %arg0, %c0_i32, %c0_i32_0 : i32, i32, i32
  }
}

</mosaic_0001>

<bundles_post_ra>
// kernel: tpu_custom_call.1
= control target key start
LH: loop header
LB: loop body
LE: loop exit
PB: predicated region body
PF: predicated region fallthrough
CT: control target
= control target key end

     0   :  { %12 = vsyncpa [#allocation5], 0  ;;  %s3232_s0 = inlined_call_operand.hbm [shape: f32[2,16,64], index: 0, kind: input, shape index: {}]   ;;  %s3233_s1 = inlined_call_operand.vmem [shape: f32[2,6,128], index: 1, kind: input, shape index: {}]   ;;  %s3234_s2 = inlined_call_operand.hbm [shape: f32[64,64], index: 2, kind: input, shape index: {}]   ;;  %s3235_s3 = inlined_call_operand.hbm [shape: f32[128,128], index: 3, kind: input, shape index: {}]   ;;  %s3236_s4 = inlined_call_operand.hbm [shape: f32[3,64,128], index: 4, kind: input, shape index: {}]   ;;  %s3237_s5 = inlined_call_operand.hbm [shape: f32[3,128,128], index: 5, kind: input, shape index: {}]   ;;  %s3238_s6 = inlined_call_operand.hbm [shape: f32[64,128], index: 6, kind: input, shape index: {}]   ;;  %s3239_s7 = inlined_call_operand.hbm [shape: f32[2,16,128], index: 7, kind: output, shape index: {}]  }
   0x1   :  { %14 = vsyncpa [#allocation5 + $0x1], 0 }
   0x2   :  { %15 = vsyncpa [#allocation8], 0 }
   0x3   :  { %16 = vsyncpa [#allocation11], 0 }
   0x4   :  { %17 = vsyncpa [#allocation14], 0 }
   0x5   :  { %18 = vsyncpa [#allocation6], 0 }
   0x6   :  { %20 = vsyncpa [#allocation6 + $0x1], 0  ;;  %s2785_s24 = smov 0   ;;  %s2787_s25 = smov 0  }
   0x7   :  { %s2789_s26 = smov 0   ;;  %s2791_s27 = smov 0  }
   0x8 LB: > { %s2733_s28 = smov [#allocation7]   ;;  %s2806_s30 = sadd.s32 4294967295, %s2731_s27   ;;  %s2731_s27 = sphi %s2791_s27, %s3266_s27   ;;  %s2727_s26 = sphi %s2789_s26, %s3265_s26   ;;  %s2723_s25 = sphi %s2787_s25, %s3264_s25   ;;  %s2719_s24 = sphi %s2785_s24, %s3263_s24  }
   0x9   : > { %s226_s29 = sshll.u32 %s2733_s28, 4  ;;  %p1636_p0 = scmp.ge.s32.totalorder %s2731_s27, 1  ;;  %s2811_s29 = int_to_ptr.vmem [resolvable:$true] %s226_s29 }
   0xa   : > { %p3240_p1 = scmp.eq.s32.totalorder %s2806_s30, 0  ;;  %p214_p2 = scmp.lt.s32.totalorder %s2731_s27, 3 }
   0xb   : > { %s2734_s9 = smov [#allocation10]   ;;  %s2735_s12 = smov [#allocation9]  }
   0xc   : > { %p2813_p3 = pnand %p1636_p0, %p214_p2  ;;  %s252_s10 = sshll.u32 %s2734_s9, 4  ;;  %s2826_s10 = int_to_ptr.vmem [resolvable:$true] %s252_s10 }
   0xd   : > { %s239_s13 = sshll.u32 %s2735_s12, 4  ;;  %s2483_s16 = scalar_lea.hbm %s3234_s2, 1024  ;;  %s2828_s13 = int_to_ptr.vmem [resolvable:$true] %s239_s13 }
   0xe   : > { %s3244_s8 = scalar_select %p2813_p3, 1, 0 }
   0xf   : > { %p2401_p5 = pneg %p2813_p3  ;;  %p2484_p7 = scmp.ne.s32.totalorder %s3234_s2, %s2483_s16 }
  0x10   : > { %p2490_p11 = scmp.lt.u32.totalorder %s2483_s16, %s3234_s2 }
  0x11   : > { %p2822_p6 = pnand %p2401_p5, %p3240_p1 }
  0x13   : > { %p2838_p8 = pneg %p2822_p6 }
  0x15   : > { %p2486_p9 = pnand %p2838_p8, %p2484_p7 }
  0x17   : > { %p2487_p10 = pneg %p2486_p9 }
  0x19   : > { %p2492_p12 = pnand %p2490_p11, %p2487_p10 }
  0x1b   : > { %2495 = shalt.err (!%p2492_p12)
}
  0x1c   : > { %s2496_s22 = scalar_lea.vmem %s2811_s29, 1024  ;;  %p2504_p5 = scmp.lt.s32.totalorder %s2811_s29, %s2811_s29 }
  0x1d   : > { %p2497_p13 = scmp.ne.s32.totalorder %s2811_s29, %s2496_s22  ;;  %p2505_p4 = scmp.lt.s32.totalorder %s2496_s22, %s2496_s22 }
  0x1f   : > { %p2499_p0 = pnand %p2497_p13, %p2838_p8  ;;  %p2506_p7 = por %p2505_p4, %p2504_p5 }
  0x21   : > { %p2500_p2 = pneg %p2499_p0 }
  0x23   : > { %p2507_p9 = pnand %p2506_p7, %p2500_p2 }
  0x25   : > { %2510 = shalt.err (!%p2507_p9)
}
  0x26   : > { %s3242_s23 = smov 128   ;;  %s2737_s28 = smov 8  }
  0x27   : > { %2404 = dma.hbm_to_vmem [thread:$0]  (!%p2822_p6), %s3234_s2, 1024, %s2811_s29, [#allocation8], %s3242_s23, %s3242_s23, %s2737_s28  }
  0x28   : > { %s2511_s16 = scalar_lea.hbm %s3236_s4, 3072 }
  0x29   : > { %p2512_p4 = scmp.ne.s32.totalorder %s3236_s4, %s2511_s16  ;;  %p2518_p12 = scmp.lt.u32.totalorder %s2511_s16, %s3236_s4 }
  0x2b   : > { %p2514_p10 = pnand %p2512_p4, %p2838_p8 }
  0x2d   : > { %p2515_p11 = pneg %p2514_p10 }
  0x2f   : > { %p2520_p13 = pnand %p2518_p12, %p2515_p11 }
  0x31   : > { %2523 = shalt.err (!%p2520_p13)
}
  0x32   : > { %s2524_s29 = scalar_lea.vmem %s2826_s10, 3072  ;;  %p2532_p7 = scmp.lt.s32.totalorder %s2826_s10, %s2826_s10 }
  0x33   : > { %p2525_p0 = scmp.ne.s32.totalorder %s2826_s10, %s2524_s29  ;;  %p2533_p9 = scmp.lt.s32.totalorder %s2524_s29, %s2524_s29 }
  0x35   : > { %p2527_p2 = pnand %p2525_p0, %p2838_p8  ;;  %p2534_p4 = por %p2533_p9, %p2532_p7 }
  0x37   : > { %p2528_p5 = pneg %p2527_p2 }
  0x39   : > { %p2535_p10 = pnand %p2534_p4, %p2528_p5 }
  0x3b   : > { %2538 = shalt.err (!%p2535_p10)
}
  0x3c   : > { %2410 = dma.hbm_to_vmem [thread:$0]  (!%p2822_p6), %s3236_s4, 3072, %s2826_s10, [#allocation11], %s3242_s23, %s3242_s23, %s2737_s28  }
  0x3d   : > { %s2539_s15 = scalar_lea.hbm %s3235_s3, 2048 }
  0x3e   : > { %p2540_p11 = scmp.ne.s32.totalorder %s3235_s3, %s2539_s15  ;;  %p2546_p0 = scmp.lt.u32.totalorder %s2539_s15, %s3235_s3 }
  0x40   : > { %p2542_p12 = pnand %p2540_p11, %p2838_p8 }
  0x42   : > { %p2543_p13 = pneg %p2542_p12 }
  0x44   : > { %p2548_p2 = pnand %p2546_p0, %p2543_p13 }
  0x46   : > { %2551 = shalt.err (!%p2548_p2)
}
  0x47   : > { %s2552_s10 = scalar_lea.vmem %s2828_s13, 2048  ;;  %p2560_p4 = scmp.lt.s32.totalorder %s2828_s13, %s2828_s13 }
  0x48   : > { %p2553_p5 = scmp.ne.s32.totalorder %s2828_s13, %s2552_s10  ;;  %p2561_p10 = scmp.lt.s32.totalorder %s2552_s10, %s2552_s10 }
  0x4a   : > { %p2555_p7 = pnand %p2553_p5, %p2838_p8  ;;  %p2562_p11 = por %p2561_p10, %p2560_p4 }
  0x4c   : > { %p2556_p9 = pneg %p2555_p7 }
  0x4e   : > { %p2563_p12 = pnand %p2562_p11, %p2556_p9 }
  0x50   : > { %2566 = shalt.err (!%p2563_p12)
}
  0x51   : > { %2407 = dma.hbm_to_vmem [thread:$0]  (!%p2822_p6), %s3235_s3, 2048, %s2828_s13, [#allocation8], %s3242_s23, %s3242_s23, %s2737_s28  }
  0x52   : > { %s2738_s22 = smov [#allocation12]   ;;  %s2739_s12 = smov [#allocation13]  }
  0x53   : > { %s265_s9 = sshll.u32 %s2738_s22, 4  ;;  %s278_s14 = sshll.u32 %s2739_s12, 4  ;;  %s266_s9 = int_to_ptr.vmem [resolvable:$true] %s265_s9  ;;  %s279_s14 = int_to_ptr.vmem [resolvable:$true] %s278_s14 }
  0x54   : > { %s2567_s17 = scalar_lea.hbm %s3237_s5, 6144 }
  0x55   : > { %p2568_p13 = scmp.ne.s32.totalorder %s3237_s5, %s2567_s17  ;;  %p2574_p5 = scmp.lt.u32.totalorder %s2567_s17, %s3237_s5 }
  0x57   : > { %p2570_p0 = pnand %p2568_p13, %p2838_p8 }
  0x59   : > { %p2571_p2 = pneg %p2570_p0 }
  0x5b   : > { %p2576_p7 = pnand %p2574_p5, %p2571_p2 }
  0x5d   : > { %2579 = shalt.err (!%p2576_p7)
}
  0x5e   : > { %s2580_s13 = scalar_lea.vmem %s266_s9, 6144  ;;  %p2588_p11 = scmp.lt.s32.totalorder %s266_s9, %s266_s9 }
  0x5f   : > { %p2581_p9 = scmp.ne.s32.totalorder %s266_s9, %s2580_s13  ;;  %p2589_p12 = scmp.lt.s32.totalorder %s2580_s13, %s2580_s13 }
  0x61   : > { %p2583_p4 = pnand %p2581_p9, %p2838_p8  ;;  %p2590_p1 = por %p2589_p12, %p2588_p11 }
  0x63   : > { %p2584_p10 = pneg %p2583_p4 }
  0x65   : > { %p2591_p3 = pnand %p2590_p1, %p2584_p10 }
  0x67   : > { %2594 = shalt.err (!%p2591_p3)
}
  0x68   : > { %2413 = dma.hbm_to_vmem [thread:$0]  (!%p2822_p6), %s3237_s5, 6144, %s266_s9, [#allocation11], %s3242_s23, %s3242_s23, %s2737_s28  }
  0x69   : > { %s2595_s16 = scalar_lea.hbm %s3238_s6, 1024 }
  0x6a   : > { %p2596_p1 = scmp.ne.s32.totalorder %s3238_s6, %s2595_s16  ;;  %p2602_p0 = scmp.lt.u32.totalorder %s2595_s16, %s3238_s6 }
  0x6c   : > { %p2598_p3 = pnand %p2596_p1, %p2838_p8 }
  0x6e   : > { %p2599_p13 = pneg %p2598_p3 }
  0x70   : > { %p2604_p2 = pnand %p2602_p0, %p2599_p13 }
  0x72   : > { %2607 = shalt.err (!%p2604_p2)
}
  0x73   : > { %s2608_s21 = scalar_lea.vmem %s279_s14, 1024  ;;  %p2616_p4 = scmp.lt.s32.totalorder %s279_s14, %s279_s14 }
  0x74   : > { %p2609_p5 = scmp.ne.s32.totalorder %s279_s14, %s2608_s21  ;;  %p2617_p10 = scmp.lt.s32.totalorder %s2608_s21, %s2608_s21 }
  0x76   : > { %p2611_p7 = pnand %p2609_p5, %p2838_p8  ;;  %p2618_p11 = por %p2617_p10, %p2616_p4 }
  0x78   : > { %p2612_p9 = pneg %p2611_p7 }
  0x7a   : > { %p2619_p12 = pnand %p2618_p11, %p2612_p9 }
  0x7c   : > { %2622 = shalt.err (!%p2619_p12)
}
  0x7d   : > { %2416 = dma.hbm_to_vmem [thread:$0]  (!%p2822_p6), %s3238_s6, 1024, %s279_s14, [#allocation14], %s3242_s23, %s3242_s23, %s2737_s28  }
  0x7e   : > { %s1635_s11 = sadd.s32 4294967294, %s2731_s27   ;;  %s2958_s19 = sadd.s32 1, %s2731_s27  }
  0x7f   : > { %s33_s29 = sadd.s32 1, %s2727_s26  ;;  %s30_s22 = ssub.s32 %s2731_s27, %s2958_s19 }
  0x80   : > { %p40_p8 = scmp.ne.s32.totalorder %s2727_s26, %s2723_s25  ;;  %p31_p1 = scmp.eq.s32.totalorder %s30_s22, 0 }
  0x81   : > { %p41_p3 = scmp.eq.s32.totalorder %s2731_s27, 0  ;;  %p46_p13 = scmp.ne.s32.totalorder %s2723_s25, %s2719_s24 }
  0x82   : > { %p201_p0 = scmp.eq.s32.totalorder %s2806_s30, 1  ;;  %p3247_p5 = scmp.eq.s32.totalorder %s2806_s30, 0 }
  0x83   : > { %s2970_s12 = scalar_select %p31_p1, %s2727_s26, %s33_s29  }
  0x84   : > { %p42_p2 = por %p41_p3, %p40_p8  ;;  %p2974_p7 = por %p3247_p5, %p46_p13 }
  0x85   : > { %p2978_p6 = por %p201_p0, %p40_p8  ;;  %p207_p9 = scmp.eq.s32.totalorder %s1635_s11, 1 }
  0x86   : > { %p2430_p4 = scmp.lt.s32.totalorder %s2731_s27, 2  ;;  %s292_s16 = sand.u32 1, %s2727_s26  }
  0x87   : > { %s3249_s14 = scalar_select %p2978_p6, 1, 0 }
  0x88   : > { %p2984_p10 = por %p207_p9, %p46_p13  ;;  %s1643_s18 = sshll.u32 %s292_s16, 4 }
  0x89   : > { %s1672_s20 = sshll.u32 %s2731_s27, 8  ;;  %s296_s13 = scalar_lea.vmem [#allocation4], %s1643_s18 }
  0x8a   : > { %s3250_s17 = scalar_select %p2984_p10, 1, 0 }
  0x8b   : > { %s2992_s9 = scalar_lea.hbm %s3232_s0, %s1672_s20  ;;  %s303_s29 = sshll.u32 %s296_s13, 4  ;;  %s2998_s29 = int_to_ptr.vmem [resolvable:$true] %s303_s29 }
  0x8c   : > { %p2994_p11 = pnand %p2430_p4, %p42_p2  ;;  %s3000_s22 = scalar_lea.sflag [#allocation5], %s292_s16 }
  0x8d   : > { %s2623_s23 = scalar_lea.hbm %s2992_s9, 256  ;;  %s2628_s10 = scalar_lea.hbm %s3232_s0, 512 }
  0x8e   : > { %p2624_p12 = scmp.ne.s32.totalorder %s2992_s9, %s2623_s23  ;;  %p2625_p8 = pneg %p2994_p11 }
  0x8f   : > { %p2629_p13 = scmp.lt.u32.totalorder %s2992_s9, %s3232_s0  ;;  %p2630_p0 = scmp.lt.u32.totalorder %s2628_s10, %s2623_s23 }
  0x90   : > { %p2626_p1 = pnand %p2625_p8, %p2624_p12  ;;  %p2632_p5 = scmp.lt.u32.totalorder %s2623_s23, %s2992_s9 }
  0x91   : > { %p2631_p2 = por %p2630_p0, %p2629_p13 }
  0x92   : > { %p2627_p3 = pneg %p2626_p1 }
  0x93   : > { %p2633_p9 = por %p2632_p5, %p2631_p2 }
  0x95   : > { %p2634_p4 = pnand %p2633_p9, %p2627_p3 }
  0x97   : > { %2637 = shalt.err (!%p2634_p4)
}
  0x98   : > { %s2638_s16 = scalar_lea.vmem %s2998_s29, 256  ;;  %s2740_s18 = smov [#allocation4]  }
  0x99   : > { %p2639_p12 = scmp.ne.s32.totalorder %s2998_s29, %s2638_s16  ;;  %s2643_s20 = sshll.u32 %s2740_s18, 4  ;;  %s2644_s20 = int_to_ptr.vmem [resolvable:$false] %s2643_s20 }
  0x9a   : > { %s2645_s21 = scalar_lea.vmem %s2644_s20, 512  ;;  %p2646_p6 = scmp.lt.s32.totalorder %s2998_s29, %s2644_s20 }
  0x9b   : > { %p2641_p1 = pnand %p2639_p12, %p2625_p8  ;;  %p2647_p13 = scmp.lt.s32.totalorder %s2645_s21, %s2638_s16 }
  0x9d   : > { %p2642_p10 = pneg %p2641_p1  ;;  %p2648_p0 = por %p2647_p13, %p2646_p6 }
  0x9f   : > { %p2649_p2 = pnand %p2648_p0, %p2642_p10 }
  0xa1   : > { %2652 = shalt.err (!%p2649_p2)
}
  0xa2   : > { %s3252_s23 = smov 128   ;;  %p3253_p8 = scmp.ne.s32.totalorder %s3244_s8, 0 }
  0xa3   : > { %2420 = dma.hbm_to_vmem [thread:$0]  (!%p2994_p11), %s2992_s9, 256, %s2998_s29, %s3000_s22, %s3252_s23, %s3252_s23, %s2737_s28  }
  0xa4   : > { %322 = sbr.rel (%p3253_p8) target bundleno = 1288 (0x508), region = 48  ;;  %s3034_s10 = sand.u32 (!%p3253_p8), 1, %s2723_s25  }
  0xa5   : > { %s1647_s13 = sshll.u32 (!%p3253_p8), %s3034_s10, 4  ;;  %s325_s16 = scalar_lea.sflag (!%p3253_p8), [#allocation5], %s3034_s10 }
  0xa6   : > { %s3040_s11 = scalar_lea.vmem (!%p3253_p8), [#allocation4], %s1647_s13 }
  0xab   : > { %2698 = dma.done.wait (%p2974_p7), %s325_s16, 256  }
  0xac   : > { %2700 = vsyncadd (%p2974_p7), %s325_s16, 4294967040  ;;  %p3254_p6 = scmp.eq.s32.totalorder %s2806_s30, 0 }
  0xae   : > { %2702 = dma.done.wait (%p3254_p6), [#allocation8], 3072   ;;  %p3255_p10 = pmov %p3254_p6 }
  0xaf   : > { %p3256_p11 = pmov %p3254_p6 }
  0xb0   : > { %2704 = vsyncadd (%p3255_p10), [#allocation8], 4294964224 }
  0xb1   : > { %2706 = dma.done.wait (%p3256_p11), [#allocation11], 9216   ;;  %p3257_p3 = pmov %p3254_p6 }
  0xb3   : > { %2708 = vsyncadd (%p3257_p3), [#allocation11], 4294958080  ;;  %p3258_p5 = pmov %p3257_p3 }
  0xb4   : > { %p3259_p9 = pmov %p3257_p3 }
  0xb5   : > { %2710 = dma.done.wait (%p3258_p5), [#allocation14], 1024  }
  0xb6   : > { %2712 = vsyncadd (%p3259_p9), [#allocation14], 4294966272  ;;  %v390_v0 = vld [vmem:[#allocation13] sm:$0xff]  ;;  %v391_v1 = vld [vmem:[#allocation13 + $0x8] sm:$0xff]  ;;  %vm398_vm0 = vcmask 523264   ;;  %vm693_vm1 = vcmask 516096  }
  0xb7   : > { %v392_v2 = vld [vmem:[#allocation13 + $0x10] sm:$0xff]  ;;  %v2113_v3 = vpack.c.bf16 %v391_v1, %v390_v0  ;;  %v393_v4 = vld [vmem:[#allocation13 + $0x18] sm:$0xff]  ;;  %v482_v5 = vld [vmem:[#allocation7] sm:$0xff]  ;;  %v2741_v40 = vmov 0.0   ;;  %p383_p7 = scmp.lt.s32.totalorder %s2806_s30, 1  ;;  %s382_s22 = scalar_lea.vmem [#allocation15], %s1647_s13 }
  0xb8   : > { %v483_v6 = vld [vmem:[#allocation7 + $0x8] sm:$0xff]  ;;  %v2117_v7 = vpack.c.bf16 %v393_v4, %v392_v2  ;;  %v394_v9 = vld [vmem:[#allocation13 + $0x20] sm:$0xff]  ;;  %v484_v11 = vld [vmem:[#allocation7 + $0x10] sm:$0xff]  ;;  %694 = vst.msk [vmem:[#allocation2] sm:$0x1] %vm693_vm1, %v2741_v40  ;;  %s1502_s18 = sshll.u32 %s382_s22, 4  ;;  %s3183_s18 = int_to_ptr.vmem [resolvable:$true] %s1502_s18 }
  0xb9   : > { %v2129_v8 = vpack.c.bf16 %v483_v6, %v482_v5  ;;  %v395_v10 = vld [vmem:[#allocation13 + $0x28] sm:$0xff]  ;;  %2114 = vmatprep.subr.bf16.mxu0 %v2113_v3  ;;  %v485_v12 = vld [vmem:[#allocation7 + $0x18] sm:$0xff]  ;;  %v3059_v14 = vld [vmem:[%s3040_s11] sm:$0xff]  ;;  %695 = vst.msk [vmem:[#allocation2 + $0x11] sm:$0x1] %vm693_vm1, %v2741_v40  ;;  %s384_s8 = scalar_select %p383_p7, %s2806_s30, 1 }
  0xba   : > { %2116 = vmatpush3.bf16.msra.mxu0 %v2113_v3  ;;  %v2133_v13 = vpack.c.bf16 %v485_v12, %v484_v11  ;;  %v486_v15 = vld [vmem:[#allocation7 + $0x20] sm:$0xff]  ;;  %v487_v16 = vld [vmem:[#allocation7 + $0x28] sm:$0xff]  ;;  %v2121_v17 = vpack.c.bf16 %v395_v10, %v394_v9  ;;  %v396_v18 = vld [vmem:[#allocation13 + $0x30] sm:$0xff]  ;;  %1840 = vmatprep.mubr.msk.f32.mxu0 %vm398_vm0, %v3059_v14  ;;  %v565_v26 = vmul.f32 %v3059_v14, %v3059_v14  ;;  %s1673_s20 = sshll.u32 %s2806_s30, 8  ;;  %s1489_s30 = scalar_lea.sflag [#allocation6], %s3034_s10 }
  0xbb   : > { %2130 = vmatprep.subr.bf16.mxu1 %v2129_v8  ;;  %2118 = vmatprep.subr.bf16.mxu0 %v2117_v7  ;;  %v397_v19 = vld [vmem:[#allocation13 + $0x38] sm:$0xff]  ;;  %v2137_v20 = vpack.c.bf16 %v487_v16, %v486_v15  ;;  %v488_v21 = vld [vmem:[#allocation7 + $0x30] sm:$0xff]  ;;  %v711_v28 = vld [vmem:[#allocation10 + $0x40] sm:$0xff]  ;;  %1189 = vst [vmem:[#allocation3] sm:$0x1] %v2741_v40  ;;  %s1654_s28 = sshll.u32 %s384_s8, 3  ;;  %s3188_s13 = scalar_lea.hbm %s3239_s7, %s1673_s20 }
  0xbc   : > { %2132 = vmatpush3.bf16.msra.mxu1 %v2129_v8  ;;  %v489_v22 = vld [vmem:[#allocation7 + $0x38] sm:$0xff]  ;;  %1859 = vmatprep.mubr.msk.f32.mxu1 %vm398_vm0, %v3059_v14  ;;  %v2125_v23 = vpack.c.bf16 %v397_v19, %v396_v18  ;;  %v712_v29 = vld [vmem:[#allocation10 + $0x48] sm:$0xff]  ;;  %v713_v31 = vld [vmem:[#allocation10 + $0x50] sm:$0xff]  ;;  %1190 = vst [vmem:[#allocation3 + $0x11] sm:$0x1] %v2741_v40  ;;  %s386_s29 = scalar_lea.vmem %s3233_s1, %s1654_s28  ;;  %s2653_s16 = scalar_lea.vmem %s3183_s18, 256 }
  0xbd   : > { %2134 = vmatprep.subr.bf16.mxu1 %v2133_v13  ;;  %v2141_v24 = vpack.c.bf16 %v489_v22, %v488_v21  ;;  %v3066_v25 = vld [vmem:[%s3040_s11 + $0x8] sm:$0xff]  ;;  %v2161_v30 = vpack.c.bf16 %v712_v29, %v711_v28  ;;  %v715_v34 = vld [vmem:[#allocation10 + $0x60] sm:$0xff]  ;;  %v717_v37 = vld [vmem:[#allocation10 + $0x70] sm:$0xff]  ;;  %v675_v28 = vlaneseq  ;;  %p2654_p4 = scmp.ne.s32.totalorder %s3183_s18, %s2653_s16  ;;  %p3260_p12 = scmp.ne.s32.totalorder %s3249_s14, 0 }
  0xbe   : > { %2120 = vmatpush3.bf16.msra.mxu0 %v2117_v7  ;;  %v566_v27 = vmul.f32 %v3066_v25, %v3066_v25  ;;  %v714_v32 = vld [vmem:[#allocation10 + $0x58] sm:$0xff]  ;;  %v716_v35 = vld [vmem:[#allocation10 + $0x68] sm:$0xff]  ;;  %v700_v41 = vld [vmem:[#allocation10] sm:$0xff]  ;;  %s2742_s11 = smov [#allocation15]  }
  0xbf   : > { %2122 = vmatprep.subr.bf16.mxu0 %v2121_v17  ;;  %v2165_v33 = vpack.c.bf16 %v714_v32, %v713_v31  ;;  %v2169_v36 = vpack.c.bf16 %v716_v35, %v715_v34  ;;  %v718_v38 = vld [vmem:[#allocation10 + $0x78] sm:$0xff]  ;;  %v701_v42 = vld [vmem:[#allocation10 + $0x8] sm:$0xff]  ;;  %v981_v44 = vld [vmem:[#allocation9] sm:$0xff]  ;;  %v3122_v32 = vshrl.u32 %v675_v28, 7  ;;  %p2655_p1 = pnand %p2654_p4, %p3260_p12  ;;  %s2657_s8 = sshll.u32 %s2742_s11, 4  ;;  %s2658_s8 = int_to_ptr.vmem [resolvable:$false] %s2657_s8 }
  0xc0   : > { %2136 = vmatpush3.bf16.msra.mxu1 %v2133_v13  ;;  %v2173_v39 = vpack.c.bf16 %v718_v38, %v717_v37  ;;  %v3078_v43 = vpack.c.bf16 %v701_v42, %v700_v41  ;;  %v982_v45 = vld [vmem:[#allocation9 + $0x8] sm:$0xff]  ;;  %v983_v46 = vld [vmem:[#allocation9 + $0x10] sm:$0xff]  ;;  %v984_v48 = vld [vmem:[#allocation9 + $0x18] sm:$0xff]  ;;  %s2659_s28 = scalar_lea.vmem %s2658_s8, 512  ;;  %p2660_p0 = scmp.lt.s32.totalorder %s3183_s18, %s2658_s8 }
  0xc1   : > { %2138 = vmatprep.subr.bf16.mxu1 %v2137_v20  ;;  %v3081_v47 = vpack.c.bf16 %v982_v45, %v981_v44  ;;  %v3083_v49 = vpack.c.bf16 %v984_v48, %v983_v46  ;;  %v985_v50 = vld [vmem:[#allocation9 + $0x20] sm:$0xff]  ;;  %v986_v51 = vld [vmem:[#allocation9 + $0x28] sm:$0xff]  ;;  %v987_v53 = vld [vmem:[#allocation9 + $0x30] sm:$0xff]  ;;  %v685_v40 = vsub.s32 1, %v3122_v32  ;;  %v977_v28 = vsub.s32 4, %v3122_v32  ;;  %p2656_p13 = pneg %p2655_p1  ;;  %p2661_p2 = scmp.lt.s32.totalorder %s2659_s28, %s2653_s16 }
  0xc2   : > { %2124 = vmatpush3.bf16.msra.mxu0 %v2121_v17  ;;  %v3088_v52 = vpack.c.bf16 %v986_v51, %v985_v50  ;;  %v988_v54 = vld [vmem:[#allocation9 + $0x38] sm:$0xff]  ;;  %v989_v56 = vld [vmem:[#allocation9 + $0x40] sm:$0xff]  ;;  %v990_v57 = vld [vmem:[#allocation9 + $0x48] sm:$0xff] }
  0xc3   : > { %2126 = vmatprep.subr.bf16.mxu0 %v2125_v23  ;;  %v3092_v55 = vpack.c.bf16 %v988_v54, %v987_v53  ;;  %v3096_v58 = vpack.c.bf16 %v990_v57, %v989_v56  ;;  %v991_v59 = vld [vmem:[#allocation9 + $0x50] sm:$0xff]  ;;  %v992_v60 = vld [vmem:[#allocation9 + $0x58] sm:$0xff]  ;;  %v993_v62 = vld [vmem:[#allocation9 + $0x60] sm:$0xff]  ;;  %p2662_p8 = por %p2661_p2, %p2660_p0 }
  0xc4   : > { %2140 = vmatpush3.bf16.msra.mxu1 %v2137_v20  ;;  %v3100_v61 = vpack.c.bf16 %v992_v60, %v991_v59  ;;  %v994_v63 = vld [vmem:[#allocation9 + $0x68] sm:$0xff] }
  0xc5   : > { %2142 = vmatprep.subr.bf16.mxu1 %v2141_v24  ;;  %v3104_v0 = vpack.c.bf16 %v994_v63, %v993_v62  ;;  %v704_v63 = vld [vmem:[#allocation10 + $0x20] sm:$0xff]  ;;  %p2663_p6 = pnand %p2662_p8, %p2656_p13 }
  0xc6   : > { %2128 = vmatpush3.bf16.msra.mxu0 %v2125_v23 }
  0xc7   : > { %2146 = vmatprep.subr.bf16.mxu0 %v2129_v8 }
  0xc8   : > { %2144 = vmatpush3.bf16.msra.mxu1 %v2141_v24 }
  0xc9   : > { %1841 = vmatmul.mubr.msk.f32.vlgmr.msra.gmra.mrb[0].mxu0 %vm398_vm0, %v3066_v25  ;;  %2162 = vmatprep.subr.bf16.mxu1 %v2161_v30 }
  0xca   : > { %2148 = vmatpush3.bf16.msra.mxu0 %v2129_v8  ;;  %1878 = vmatprep.mubr.msk.f32.mxu0 %vm398_vm0, %v565_v26 }
  0xcb   : > { %1860 = vmatmul.mubr.msk.f32.vlgmr.msra.gmra.mrb[0].mxu1 %vm398_vm0, %v3066_v25  ;;  %2150 = vmatprep.subr.bf16.mxu0 %v2133_v13 }
  0xcc   : > { %2164 = vmatpush3.bf16.msra.mxu1 %v2161_v30 }
  0xcd   : > { %2166 = vmatprep.subr.bf16.mxu1 %v2165_v33 }
  0xce   : > { %2152 = vmatpush3.bf16.msra.mxu0 %v2133_v13 }
  0xcf   : > { %2154 = vmatprep.subr.bf16.mxu0 %v2137_v20 }
  0xd0   : > { %2168 = vmatpush3.bf16.msra.mxu1 %v2165_v33  ;;  %v3124_v33 = vld [vmem:[%s386_s29] sm:$0x3f] }
  0xd1   : > { %2170 = vmatprep.subr.bf16.mxu1 %v2169_v36  ;;  %v3127_v35 = vadd.f32 1.0, %v3124_v33  ;;  %v686_v44 = vrot.slane %v3124_v33, %v685_v40  ;;  %v1195_v40 = vld [vmem:[#allocation12] sm:$0xff] }
  0xd2   : > { %2156 = vmatpush3.bf16.msra.mxu0 %v2137_v20 }
  0xd3   : > { %2158 = vmatprep.subr.bf16.mxu0 %v2141_v24 }
  0xd4   : > { %2172 = vmatpush3.bf16.msra.mxu1 %v2169_v36  ;;  %v677_v36 = vsub.s32 0, %v3122_v32 }
  0xd5   : > { %2174 = vmatprep.subr.bf16.mxu1 %v2173_v39 }
  0xd6   : > { %2160 = vmatpush3.bf16.msra.mxu0 %v2141_v24 }
  0xd7   : > { %2210 = vmatprep.subr.bf16.mxu0 %v3081_v47 }
  0xd8   : > { %2176 = vmatpush3.bf16.msra.mxu1 %v2173_v39  ;;  %v678_v39 = vrot.slane %v3127_v35, %v677_v36 }
  0xd9   : > { %1879 = vmatmul.mubr.msk.f32.vlgmr.msra.gmra.mrb[2].mxu0 %vm398_vm0, %v566_v27  ;;  %2178 = vmatprep.subr.bf16.mxu1 %v3078_v43 }
  0xda   : > { %2212 = vmatpush3.bf16.msra.mxu0 %v3081_v47 }
  0xdb   : > { %2214 = vmatprep.subr.bf16.mxu0 %v3083_v49 }
  0xde   : > { %2216 = vmatpush3.bf16.msra.mxu0 %v3083_v49 }
  0xdf   : > { %2218 = vmatprep.subr.bf16.mxu0 %v3088_v52 }
  0xe2   : > { %2220 = vmatpush3.bf16.msra.mxu0 %v3088_v52 }
  0xe3   : > { %2222 = vmatprep.subr.bf16.mxu0 %v3092_v55 }
  0xe6   : > { %2224 = vmatpush3.bf16.msra.mxu0 %v3092_v55 }
  0xe7   : > { %2226 = vmatprep.subr.bf16.mxu0 %v3096_v58 }
  0xea   : > { %2228 = vmatpush3.bf16.msra.mxu0 %v3096_v58 }
  0xeb   : > { %2230 = vmatprep.subr.bf16.mxu0 %v3100_v61 }
  0xee   : > { %2232 = vmatpush3.bf16.msra.mxu0 %v3100_v61 }
  0xef   : > { %2234 = vmatprep.subr.bf16.mxu0 %v3104_v0 }
  0xf2   : > { %2236 = vmatpush3.bf16.msra.mxu0 %v3104_v0 }
 0x19c   : > { %v3109_v1 = vpop.f32.mrb[0].mxu0 }
 0x19d   : > { %v3111_v2 = vpop.f32.mrb[1].mxu0 }
 0x19e   : > { %v1861_v3 = vpop.f32.mrb[0].mxu1 }
 0x19f   : > { %v649_v4 = vsel %vm398_vm0, %v1861_v3, 0.0  ;;  %v556_v5 = vpop.f32.mrb[1].mxu1  ;;  %v705_v3 = vld [vmem:[#allocation10 + $0x28] sm:$0xff] }
 0x1a0   : > { %v648_v6 = vsel %vm398_vm0, %v556_v5, 0.0  ;;  %v2185_v5 = vpack.c.bf16 %v705_v3, %v704_v63  ;;  %v1224_v3 = vld [vmem:[#allocation12 + $0xd0] sm:$0xff] }
 0x1a1   : > { %v650_v7 = vadd.f32 %v649_v4, %v648_v6  ;;  %v706_v6 = vld [vmem:[#allocation10 + $0x30] sm:$0xff] }
 0x1a3   : > { %v651_v8 = vrot.slane %v650_v7, 4 }
 0x1a5   : > { %v652_v9 = vadd.f32 %v651_v8, %v650_v7  ;;  %v707_v7 = vld [vmem:[#allocation10 + $0x38] sm:$0xff] }
 0x1a6   : > { %v2189_v8 = vpack.c.bf16 %v707_v7, %v706_v6  ;;  %v1203_v6 = vld [vmem:[#allocation12 + $0x40] sm:$0xff]  ;;  %v1204_v7 = vld [vmem:[#allocation12 + $0x48] sm:$0xff] }
 0x1a7   : > { %v653_v10 = vrot.slane %v652_v9, 2 }
 0x1a9   : > { %v654_v12 = vadd.f32 %v653_v10, %v652_v9  ;;  %v884_v9 = vld [vmem:[#allocation10 + $0x80] sm:$0xff]  ;;  %v885_v10 = vld [vmem:[#allocation10 + $0x88] sm:$0xff] }
 0x1ab   : > { %v655_v18 = vrot.slane %v654_v12, 1 }
 0x1ac   : > { %v1880_v11 = vpop.f32.mrb[2].mxu0 }
 0x1ad   : > { %v659_v13 = vsel %vm398_vm0, %v1880_v11, 0.0  ;;  %v639_v15 = vpop.f32.mrb[3].mxu0  ;;  %v656_v21 = vadd.f32 %v655_v18, %v654_v12  ;;  %v2193_v11 = vpack.c.bf16 %v885_v10, %v884_v9  ;;  %v886_v12 = vld [vmem:[#allocation10 + $0x90] sm:$0xff]  ;;  %v1226_v9 = vld [vmem:[#allocation12 + $0xe0] sm:$0xff]  ;;  %v1227_v10 = vld [vmem:[#allocation12 + $0xe8] sm:$0xff] }
 0x1ae   : > { %v658_v16 = vsel %vm398_vm0, %v639_v15, 0.0 }
 0x1af   : > { %v660_v17 = vadd.f32 %v659_v13, %v658_v16  ;;  %v657_v24 = vmul.f32 0.00390625, %v656_v21  ;;  %v887_v13 = vld [vmem:[#allocation10 + $0x98] sm:$0xff]  ;;  %v888_v16 = vld [vmem:[#allocation10 + $0xa0] sm:$0xff] }
 0x1b0   : > { %v2197_v15 = vpack.c.bf16 %v887_v13, %v886_v12  ;;  %v891_v21 = vld [vmem:[#allocation10 + $0xb8] sm:$0xff]  ;;  %v1205_v12 = vld [vmem:[#allocation12 + $0x50] sm:$0xff] }
 0x1b1   : > { %v661_v19 = vrot.slane %v660_v17, 4  ;;  %v668_v30 = vmul.f32 %v657_v24, %v657_v24  ;;  %v673_v37 = vsub.f32 %v3059_v14, %v657_v24  ;;  %v674_v38 = vsub.f32 %v3066_v25, %v657_v24  ;;  %v702_v14 = vld [vmem:[#allocation10 + $0x10] sm:$0xff]  ;;  %v703_v25 = vld [vmem:[#allocation10 + $0x18] sm:$0xff] }
 0x1b2   : > { %v2181_v62 = vpack.c.bf16 %v703_v25, %v702_v14  ;;  %v995_v24 = vld [vmem:[#allocation9 + $0x70] sm:$0xff]  ;;  %v1222_v14 = vld [vmem:[#allocation12 + $0xc0] sm:$0xff]  ;;  %v1223_v25 = vld [vmem:[#allocation12 + $0xc8] sm:$0xff] }
 0x1b3   : > { %v662_v20 = vadd.f32 %v661_v19, %v660_v17  ;;  %v679_v41 = vmul.f32 %v678_v39, %v673_v37  ;;  %v680_v42 = vmul.f32 %v678_v39, %v674_v38  ;;  %v889_v17 = vld [vmem:[#allocation10 + $0xa8] sm:$0xff]  ;;  %v1217_v38 = vld [vmem:[#allocation12 + $0x98] sm:$0xff] }
 0x1b4   : > { %v2201_v19 = vpack.c.bf16 %v889_v17, %v888_v16  ;;  %v1206_v13 = vld [vmem:[#allocation12 + $0x58] sm:$0xff] }
 0x1b5   : > { %v663_v22 = vrot.slane %v662_v20, 2  ;;  %v1229_v16 = vld [vmem:[#allocation12 + $0xf8] sm:$0xff] }
 0x1b7   : > { %v664_v23 = vadd.f32 %v663_v22, %v662_v20  ;;  %v890_v20 = vld [vmem:[#allocation10 + $0xb0] sm:$0xff] }
 0x1b8   : > { %v2205_v22 = vpack.c.bf16 %v891_v21, %v890_v20  ;;  %v1209_v21 = vld [vmem:[#allocation12 + $0x70] sm:$0xff] }
 0x1b9   : > { %v665_v26 = vrot.slane %v664_v23, 1 }
 0x1bb   : > { %v666_v27 = vadd.f32 %v665_v26, %v664_v23  ;;  %v996_v26 = vld [vmem:[#allocation9 + $0x78] sm:$0xff] }
 0x1bd   : > { %v667_v29 = vmul.f32 0.00390625, %v666_v27  ;;  %v2237_v27 = vpack.c.bf16 %v996_v26, %v995_v24  ;;  %v1383_v24 = vld [vmem:[#allocation12 + $0x100] sm:$0xff]  ;;  %v1384_v26 = vld [vmem:[#allocation12 + $0x108] sm:$0xff] }
 0x1bf   : > { %v669_v31 = vsub.f32 %v667_v29, %v668_v30  ;;  %2238 = vmatprep.subr.bf16.mxu0 %v2237_v27  ;;  %v978_v29 = vrot.slane %v3124_v33, %v977_v28 }
 0x1c0   : > { %2240 = vmatpush3.bf16.msra.mxu0 %v2237_v27 }
 0x1c1   : > { %v670_v34 = vadd.f32 1e-05, %v669_v31  ;;  %2242 = vmatprep.subr.bf16.mxu0 %v3081_v47 }
 0x1c3   : > { %2479 = vrsqrt.f32 %v670_v34 }
 0x1cd   : > { %v2480_v45 = vpop.eup %2479 }
 0x1ce   : > { %v681_v46 = vmul.f32 %v2480_v45, %v679_v41  ;;  %v682_v48 = vmul.f32 %v2480_v45, %v680_v42  ;;  %v1219_v42 = vld [vmem:[#allocation12 + $0xa8] sm:$0xff]  ;;  %v1197_v45 = vld [vmem:[#allocation12 + $0x10] sm:$0xff] }
 0x1d0   : > { %v687_v50 = vadd.f32 %v686_v44, %v681_v46  ;;  %v688_v51 = vadd.f32 %v686_v44, %v682_v48  ;;  %v1198_v46 = vld [vmem:[#allocation12 + $0x18] sm:$0xff] }
 0x1d1   : > { %v2309_v48 = vpack.c.bf16 %v1198_v46, %v1197_v45 }
 0x1d2   : > { %v689_v53 = vmul.f32 0.2, %v687_v50  ;;  %v690_v54 = vmul.f32 0.2, %v688_v51 }
 0x1d4   : > { %v691_v56 = vmax.f32 %v687_v50, %v689_v53  ;;  %v692_v57 = vmax.f32 %v688_v51, %v690_v54  ;;  %v1220_v50 = vld [vmem:[#allocation12 + $0xb0] sm:$0xff]  ;;  %v1221_v51 = vld [vmem:[#allocation12 + $0xb8] sm:$0xff]  ;;  %v1199_v54 = vld [vmem:[#allocation12 + $0x20] sm:$0xff] }
 0x1d5   : > { %v2285_v53 = vpack.c.bf16 %v1221_v51, %v1220_v50 }
 0x1d6   : > { %696 = vst.msk [vmem:[#allocation2 + $0x1] sm:$0xff] %vm398_vm0, %v691_v56  ;;  %697 = vst.msk [vmem:[#allocation2 + $0x9] sm:$0xff] %vm398_vm0, %v692_v57  ;;  %v1200_v56 = vld [vmem:[#allocation12 + $0x28] sm:$0xff] }
 0x1d7   : > { %v2313_v57 = vpack.c.bf16 %v1200_v56, %v1199_v54 }
 0x1dd   : > { %v708_v59 = vld [vmem:[#allocation2 + $0x1] sm:$0xff]  ;;  %v709_v60 = vld [vmem:[#allocation2 + $0x9] sm:$0xff] }
 0x1de   : > { %1897 = vmatprep.mubr.msk.f32.mxu1 %vm398_vm0, %v708_v59  ;;  %v698_v4 = vld [vmem:[#allocation2] sm:$0xff]  ;;  %v882_v23 = vld [vmem:[#allocation2 + $0xa] sm:$0xff]  ;;  %v2289_v59 = vpack.c.bf16 %v1223_v25, %v1222_v14  ;;  %v1181_v14 = vsub.s32 3, %v3122_v32 }
 0x1df   : > { %1898 = vmatmul.mubr.msk.f32.vlgmr.msra.gmra.mrb[2].mxu1 %vm398_vm0, %v709_v60  ;;  %v881_v18 = vld [vmem:[#allocation2 + $0x2] sm:$0xff] }
 0x1e0   : > { %2180 = vmatpush3.bf16.msra.mxu1 %v3078_v43  ;;  %1916 = vmatprep.mubr.msk.f32.mxu1 %vm398_vm0, %v698_v4  ;;  %v699_v43 = vld [vmem:[#allocation2 + $0x8] sm:$0xff]  ;;  %v1201_v60 = vld [vmem:[#allocation12 + $0x30] sm:$0xff] }
 0x1e1   : > { %2182 = vmatprep.subr.bf16.mxu1 %v2181_v62  ;;  %v1225_v4 = vld [vmem:[#allocation12 + $0xd8] sm:$0xff] }
 0x1e4   : > { %2184 = vmatpush3.bf16.msra.mxu1 %v2181_v62  ;;  %v1202_v62 = vld [vmem:[#allocation12 + $0x38] sm:$0xff] }
 0x1e5   : > { %2186 = vmatprep.subr.bf16.mxu1 %v2185_v5  ;;  %v2317_v63 = vpack.c.bf16 %v1202_v62, %v1201_v60  ;;  %v1182_v60 = vrot.slane %v3124_v33, %v1181_v14 }
 0x1e8   : > { %2188 = vmatpush3.bf16.msra.mxu1 %v2185_v5  ;;  %v2293_v5 = vpack.c.bf16 %v1225_v4, %v1224_v3 }
 0x1e9   : > { %2190 = vmatprep.subr.bf16.mxu1 %v2189_v8 }
 0x1ec   : > { %2192 = vmatpush3.bf16.msra.mxu1 %v2189_v8  ;;  %v2321_v8 = vpack.c.bf16 %v1204_v7, %v1203_v6 }
 0x1ed   : > { %2194 = vmatprep.subr.bf16.mxu1 %v2193_v11 }
 0x1ef   : > { %1917 = vmatmul.mubr.msk.f32.vlgmr.msra.gmra.mrb[2].mxu1 %vm398_vm0, %v699_v43  ;;  %v1228_v43 = vld [vmem:[#allocation12 + $0xf0] sm:$0xff] }
 0x1f0   : > { %2196 = vmatpush3.bf16.msra.mxu1 %v2193_v11  ;;  %1935 = vmatprep.mubr.msk.f32.mxu1 %vm398_vm0, %v881_v18  ;;  %v2297_v11 = vpack.c.bf16 %v1227_v10, %v1226_v9  ;;  %v2301_v17 = vpack.c.bf16 %v1229_v16, %v1228_v43  ;;  %v1207_v18 = vld [vmem:[#allocation12 + $0x60] sm:$0xff]  ;;  %v1389_v16 = vld [vmem:[#allocation12 + $0x130] sm:$0xff] }
 0x1f1   : > { %2198 = vmatprep.subr.bf16.mxu1 %v2197_v15 }
 0x1f4   : > { %2200 = vmatpush3.bf16.msra.mxu1 %v2197_v15  ;;  %v2325_v15 = vpack.c.bf16 %v1206_v13, %v1205_v12  ;;  %v1387_v12 = vld [vmem:[#allocation12 + $0x120] sm:$0xff]  ;;  %v1388_v13 = vld [vmem:[#allocation12 + $0x128] sm:$0xff] }
 0x1f5   : > { %2202 = vmatprep.subr.bf16.mxu1 %v2201_v19  ;;  %v2345_v43 = vpack.c.bf16 %v1388_v13, %v1387_v12 }
 0x1f8   : > { %2204 = vmatpush3.bf16.msra.mxu1 %v2201_v19  ;;  %v1208_v19 = vld [vmem:[#allocation12 + $0x68] sm:$0xff] }
 0x1f9   : > { %2206 = vmatprep.subr.bf16.mxu1 %v2205_v22  ;;  %v2329_v20 = vpack.c.bf16 %v1208_v19, %v1207_v18  ;;  %v1391_v19 = vld [vmem:[#allocation12 + $0x140] sm:$0xff] }
 0x1fc   : > { %2208 = vmatpush3.bf16.msra.mxu1 %v2205_v22  ;;  %v1210_v22 = vld [vmem:[#allocation12 + $0x78] sm:$0xff] }
 0x1ff   : > { %1936 = vmatmul.mubr.msk.f32.vlgmr.msra.gmra.mrb[2].mxu1 %vm398_vm0, %v882_v23  ;;  %v2333_v23 = vpack.c.bf16 %v1210_v22, %v1209_v21  ;;  %v1393_v22 = vld [vmem:[#allocation12 + $0x150] sm:$0xff] }
 0x2d2   : > { %v1937_v30 = vpop.f32.mrb[2].mxu1 }
 0x2d3   : > { %v964_v31 = vpop.f32.mrb[3].mxu1  ;;  %v3149_v36 = vadd.f32 %v1937_v30, %v978_v29 }
 0x2d4   : > { %v3147_v34 = vadd.f32 %v978_v29, %v964_v31 }
 0x2d6   : > { %1970 = vmatprep.mubr.f32.mxu0 %v3147_v34  ;;  %v1072_v37 = vmul.f32 %v3147_v34, %v3147_v34 }
 0x2d7   : > { %1971 = vmatmul.mubr.f32.vlgmr.msra.gmra.mrb[4].mxu0 %v3149_v36 }
 0x2d8   : > { %2244 = vmatpush3.bf16.msra.mxu0 %v3081_v47  ;;  %2005 = vmatprep.mubr.f32.mxu0 %v1072_v37  ;;  %v1073_v47 = vmul.f32 %v3149_v36, %v3149_v36 }
 0x2d9   : > { %2246 = vmatprep.subr.bf16.mxu0 %v3083_v49 }
 0x2dc   : > { %2248 = vmatpush3.bf16.msra.mxu0 %v3083_v49  ;;  %v1214_v49 = vld [vmem:[#allocation12 + $0x80] sm:$0xff] }
 0x2dd   : > { %2250 = vmatprep.subr.bf16.mxu0 %v3088_v52 }
 0x2e0   : > { %2252 = vmatpush3.bf16.msra.mxu0 %v3088_v52  ;;  %v1215_v52 = vld [vmem:[#allocation12 + $0x88] sm:$0xff] }
 0x2e1   : > { %2254 = vmatprep.subr.bf16.mxu0 %v3092_v55 }
 0x2e4   : > { %2256 = vmatpush3.bf16.msra.mxu0 %v3092_v55  ;;  %v2273_v55 = vpack.c.bf16 %v1215_v52, %v1214_v49 }
 0x2e5   : > { %2258 = vmatprep.subr.bf16.mxu0 %v3096_v58 }
 0x2e8   : > { %2260 = vmatpush3.bf16.msra.mxu0 %v3096_v58  ;;  %v1216_v58 = vld [vmem:[#allocation12 + $0x90] sm:$0xff] }
 0x2e9   : > { %2262 = vmatprep.subr.bf16.mxu0 %v3100_v61  ;;  %v2277_v39 = vpack.c.bf16 %v1217_v38, %v1216_v58 }
 0x2ec   : > { %2264 = vmatpush3.bf16.msra.mxu0 %v3100_v61  ;;  %v1196_v61 = vld [vmem:[#allocation12 + $0x8] sm:$0xff] }
 0x2ed   : > { %2266 = vmatprep.subr.bf16.mxu0 %v3104_v0  ;;  %v2305_v41 = vpack.c.bf16 %v1196_v61, %v1195_v40 }
 0x2ef   : > { %2306 = vmatprep.subr.bf16.mxu1 %v2305_v41 }
 0x2f0   : > { %2268 = vmatpush3.bf16.msra.mxu0 %v3104_v0  ;;  %v1218_v0 = vld [vmem:[#allocation12 + $0xa0] sm:$0xff]  ;;  %2308 = vmatpush3.bf16.msra.mxu1 %v2305_v41 }
 0x2f1   : > { %2270 = vmatprep.subr.bf16.mxu0 %v2237_v27  ;;  %v2281_v44 = vpack.c.bf16 %v1219_v42, %v1218_v0  ;;  %2310 = vmatprep.subr.bf16.mxu1 %v2309_v48 }
 0x2f4   : > { %2272 = vmatpush3.bf16.msra.mxu0 %v2237_v27  ;;  %2312 = vmatpush3.bf16.msra.mxu1 %v2309_v48  ;;  %v2337_v27 = vpack.c.bf16 %v1384_v26, %v1383_v24  ;;  %v1395_v26 = vld [vmem:[#allocation12 + $0x160] sm:$0xff] }
 0x2f5   : > { %2274 = vmatprep.subr.bf16.mxu0 %v2273_v55  ;;  %2314 = vmatprep.subr.bf16.mxu1 %v2313_v57 }
 0x2f7   : > { %2006 = vmatmul.mubr.f32.vlgmr.msra.gmra.mrb[6].mxu0 %v1073_v47 }
 0x2f8   : > { %2276 = vmatpush3.bf16.msra.mxu0 %v2273_v55  ;;  %2316 = vmatpush3.bf16.msra.mxu1 %v2313_v57 }
 0x2f9   : > { %2278 = vmatprep.subr.bf16.mxu0 %v2277_v39  ;;  %2318 = vmatprep.subr.bf16.mxu1 %v2317_v63 }
 0x2fc   : > { %2280 = vmatpush3.bf16.msra.mxu0 %v2277_v39  ;;  %2320 = vmatpush3.bf16.msra.mxu1 %v2317_v63 }
 0x2fd   : > { %2282 = vmatprep.subr.bf16.mxu0 %v2281_v44  ;;  %2322 = vmatprep.subr.bf16.mxu1 %v2321_v8 }
 0x300   : > { %2284 = vmatpush3.bf16.msra.mxu0 %v2281_v44  ;;  %2324 = vmatpush3.bf16.msra.mxu1 %v2321_v8 }
 0x301   : > { %2286 = vmatprep.subr.bf16.mxu0 %v2285_v53  ;;  %2326 = vmatprep.subr.bf16.mxu1 %v2325_v15 }
 0x304   : > { %2288 = vmatpush3.bf16.msra.mxu0 %v2285_v53  ;;  %2328 = vmatpush3.bf16.msra.mxu1 %v2325_v15  ;;  %v1173_v53 = vsub.s32 2, %v3122_v32 }
 0x305   : > { %2290 = vmatprep.subr.bf16.mxu0 %v2289_v59  ;;  %2330 = vmatprep.subr.bf16.mxu1 %v2329_v20 }
 0x306   : > { %v1174_v57 = vrot.slane %v3127_v35, %v1173_v53  ;;  %v1385_v35 = vld [vmem:[#allocation12 + $0x110] sm:$0xff] }
 0x308   : > { %2292 = vmatpush3.bf16.msra.mxu0 %v2289_v59  ;;  %2332 = vmatpush3.bf16.msra.mxu1 %v2329_v20  ;;  %v1392_v20 = vld [vmem:[#allocation12 + $0x148] sm:$0xff] }
 0x309   : > { %2294 = vmatprep.subr.bf16.mxu0 %v2293_v5  ;;  %2334 = vmatprep.subr.bf16.mxu1 %v2333_v23  ;;  %v2353_v21 = vpack.c.bf16 %v1392_v20, %v1391_v19 }
 0x30c   : > { %2296 = vmatpush3.bf16.msra.mxu0 %v2293_v5  ;;  %2336 = vmatpush3.bf16.msra.mxu1 %v2333_v23  ;;  %v1394_v23 = vld [vmem:[#allocation12 + $0x158] sm:$0xff] }
 0x30d   : > { %2298 = vmatprep.subr.bf16.mxu0 %v2297_v11  ;;  %2338 = vmatprep.subr.bf16.mxu1 %v2337_v27  ;;  %v2357_v24 = vpack.c.bf16 %v1394_v23, %v1393_v22 }
 0x310   : > { %2300 = vmatpush3.bf16.msra.mxu0 %v2297_v11 }
 0x311   : > { %2302 = vmatprep.subr.bf16.mxu0 %v2301_v17 }
 0x314   : > { %2304 = vmatpush3.bf16.msra.mxu0 %v2301_v17  ;;  %v1390_v17 = vld [vmem:[#allocation12 + $0x138] sm:$0xff] }
 0x315   : > { %v2349_v18 = vpack.c.bf16 %v1390_v17, %v1389_v16 }
 0x3aa   : > { %v1972_v28 = vpop.f32.mrb[4].mxu0 }
 0x3ab   : > { %v1063_v29 = vpop.f32.mrb[5].mxu0 }
 0x3ac   : > { %v1149_v30 = vadd.f32 %v1972_v28, %v1063_v29  ;;  %v1397_v29 = vld [vmem:[#allocation12 + $0x170] sm:$0xff] }
 0x3ae   : > { %v1150_v31 = vrot.slane %v1149_v30, 4 }
 0x3b0   : > { %v1151_v37 = vadd.f32 %v1150_v31, %v1149_v30  ;;  %v1398_v30 = vld [vmem:[#allocation12 + $0x178] sm:$0xff] }
 0x3b1   : > { %v2365_v31 = vpack.c.bf16 %v1398_v30, %v1397_v29 }
 0x3b2   : > { %v1152_v47 = vrot.slane %v1151_v37, 2 }
 0x3b4   : > { %v1153_v49 = vadd.f32 %v1152_v47, %v1151_v37 }
 0x3b6   : > { %v1154_v38 = vrot.slane %v1153_v49, 1 }
 0x3b8   : > { %v1155_v61 = vadd.f32 %v1154_v38, %v1153_v49 }
 0x3ba   : > { %v1156_v42 = vmul.f32 0.00390625, %v1155_v61 }
 0x3bc   : > { %v1165_v48 = vmul.f32 %v1156_v42, %v1156_v42  ;;  %v1169_v54 = vsub.f32 %v3147_v34, %v1156_v42  ;;  %v1170_v56 = vsub.f32 %v3149_v36, %v1156_v42  ;;  %v1386_v34 = vld [vmem:[#allocation12 + $0x118] sm:$0xff] }
 0x3bd   : > { %v2341_v11 = vpack.c.bf16 %v1386_v34, %v1385_v35 }
 0x3be   : > { %v1175_v25 = vmul.f32 %v1174_v57, %v1169_v54  ;;  %v1176_v59 = vmul.f32 %v1174_v57, %v1170_v56 }
 0x3ca   : > { %v2007_v52 = vpop.f32.mrb[6].mxu0 }
 0x3cb   : > { %v1140_v55 = vpop.f32.mrb[7].mxu0 }
 0x3cc   : > { %v1157_v58 = vadd.f32 %v2007_v52, %v1140_v55  ;;  %v1478_v52 = vsub.s32 5, %v3122_v32 }
 0x3ce   : > { %v1158_v39 = vrot.slane %v1157_v58, 4  ;;  %v1479_v55 = vrot.slane %v3124_v33, %v1478_v52 }
 0x3d0   : > { %v1159_v40 = vadd.f32 %v1158_v39, %v1157_v58 }
 0x3d2   : > { %v1160_v41 = vrot.slane %v1159_v40, 2 }
 0x3d4   : > { %v1161_v0 = vadd.f32 %v1160_v41, %v1159_v40 }
 0x3d6   : > { %v1162_v44 = vrot.slane %v1161_v0, 1 }
 0x3d8   : > { %v1163_v45 = vadd.f32 %v1162_v44, %v1161_v0  ;;  %v481_v0 = vmul.f32 0.70710677, %v3109_v1  ;;  %v480_v44 = vmul.f32 0.70710677, %v3111_v2 }
 0x3da   : > { %v1164_v46 = vmul.f32 0.00390625, %v1163_v45 }
 0x3dc   : > { %v1166_v50 = vsub.f32 %v1164_v46, %v1165_v48 }
 0x3de   : > { %v1167_v51 = vadd.f32 1e-05, %v1166_v50 }
 0x3e0   : > { %2481 = vrsqrt.f32 %v1167_v51 }
 0x3ea   : > { %v2482_v62 = vpop.eup %2481 }
 0x3eb   : > { %v1177_v63 = vmul.f32 %v2482_v62, %v1175_v25  ;;  %v1178_v3 = vmul.f32 %v2482_v62, %v1176_v59 }
 0x3ed   : > { %v1183_v4 = vadd.f32 %v1182_v60, %v1177_v63  ;;  %v1184_v5 = vadd.f32 %v1182_v60, %v1178_v3 }
 0x3ef   : > { %v1185_v6 = vmul.f32 0.2, %v1183_v4  ;;  %v1186_v7 = vmul.f32 0.2, %v1184_v5 }
 0x3f1   : > { %v1187_v8 = vmax.f32 %v1183_v4, %v1185_v6  ;;  %v1188_v9 = vmax.f32 %v1184_v5, %v1186_v7 }
 0x3f3   : > { %1191 = vst [vmem:[#allocation3 + $0x1] sm:$0xff] %v1187_v8  ;;  %1192 = vst [vmem:[#allocation3 + $0x9] sm:$0xff] %v1188_v9  ;;  %2040 = vmatprep.mubr.f32.mxu0 %v1187_v8 }
 0x3f4   : > { %2041 = vmatmul.mubr.f32.vlgmr.msra.gmra.mrb[8].mxu0 %v1188_v9 }
 0x3fa   : > { %v1193_v36 = vld [vmem:[#allocation3] sm:$0xff]  ;;  %v1194_v10 = vld [vmem:[#allocation3 + $0x8] sm:$0xff] }
 0x3fb   : > { %2075 = vmatprep.mubr.f32.mxu1 %v1193_v36  ;;  %v1380_v15 = vld [vmem:[#allocation3 + $0x2] sm:$0xff]  ;;  %v1381_v37 = vld [vmem:[#allocation3 + $0xa] sm:$0xff] }
 0x3fc   : > { %2076 = vmatmul.mubr.f32.vlgmr.msra.gmra.mrb[4].mxu1 %v1194_v10 }
 0x3fd   : > { %2340 = vmatpush3.bf16.msra.mxu1 %v2337_v27  ;;  %2110 = vmatprep.mubr.f32.mxu1 %v1380_v15  ;;  %v1396_v27 = vld [vmem:[#allocation12 + $0x168] sm:$0xff] }
 0x3fe   : > { %2342 = vmatprep.subr.bf16.mxu1 %v2341_v11  ;;  %v2361_v28 = vpack.c.bf16 %v1396_v27, %v1395_v26 }
 0x401   : > { %2344 = vmatpush3.bf16.msra.mxu1 %v2341_v11 }
 0x402   : > { %2346 = vmatprep.subr.bf16.mxu1 %v2345_v43 }
 0x405   : > { %2348 = vmatpush3.bf16.msra.mxu1 %v2345_v43 }
 0x406   : > { %2350 = vmatprep.subr.bf16.mxu1 %v2349_v18 }
 0x409   : > { %2352 = vmatpush3.bf16.msra.mxu1 %v2349_v18 }
 0x40a   : > { %2354 = vmatprep.subr.bf16.mxu1 %v2353_v21 }
 0x40d   : > { %2356 = vmatpush3.bf16.msra.mxu1 %v2353_v21 }
 0x40e   : > { %2358 = vmatprep.subr.bf16.mxu1 %v2357_v24 }
 0x411   : > { %2360 = vmatpush3.bf16.msra.mxu1 %v2357_v24 }
 0x412   : > { %2362 = vmatprep.subr.bf16.mxu1 %v2361_v28 }
 0x415   : > { %2364 = vmatpush3.bf16.msra.mxu1 %v2361_v28 }
 0x416   : > { %2366 = vmatprep.subr.bf16.mxu1 %v2365_v31 }
 0x419   : > { %2368 = vmatpush3.bf16.msra.mxu1 %v2365_v31 }
 0x41c   : > { %2111 = vmatmul.mubr.f32.vlgmr.msra.gmra.mrb[4].mxu1 %v1381_v37 }
 0x4c7   : > { %v2042_v47 = vpop.f32.mrb[8].mxu0 }
 0x4c8   : > { %v1296_v49 = vpop.f32.mrb[9].mxu0 }
 0x4ef   : > { %v2112_v58 = vpop.f32.mrb[4].mxu1 }
 0x4f0   : > { %v2369_v38 = vadd.f32 %v2112_v58, %v2042_v47  ;;  %v1465_v39 = vpop.f32.mrb[5].mxu1 }
 0x4f1   : > { %v2370_v40 = vadd.f32 %v1465_v39, %v1296_v49 }
 0x4f2   : > { %v1481_v61 = vadd.f32 %v2369_v38, %v1479_v55 }
 0x4f3   : > { %v1480_v41 = vadd.f32 %v2370_v40, %v1479_v55 }
 0x4f4   : > { %v1483_v42 = vmul.f32 0.70710677, %v1481_v61 }
 0x4f5   : > { %v1482_v32 = vmul.f32 0.70710677, %v1480_v41 }
 0x4f6   : > { %v1485_v33 = vadd.f32 %v1483_v42, %v481_v0 }
 0x4f7   : > { %v1484_v45 = vadd.f32 %v1482_v32, %v480_v44 }
 0x4f8   : > { %1487 = vst [vmem:[%s382_s22 + $0x8] sm:$0xff] %v1485_v33 }
 0x4f9   : > { %1486 = vst [vmem:[%s382_s22] sm:$0xff] %v1484_v45 }
 0x4fa   : > { %2666 = shalt.err (!%p2663_p6)
}
 0x4fb   : > { %s2667_s15 = scalar_lea.hbm %s3188_s13, 256  ;;  %s2671_s22 = scalar_lea.hbm %s3239_s7, 512 }
 0x4fc   : > { %p2668_p10 = scmp.ne.s32.totalorder %s3188_s13, %s2667_s15  ;;  %p2672_p5 = scmp.lt.u32.totalorder %s3188_s13, %s3239_s7 }
 0x4fd   : > { %p2673_p9 = scmp.lt.u32.totalorder %s2671_s22, %s2667_s15  ;;  %p2675_p4 = scmp.lt.u32.totalorder %s2667_s15, %s3188_s13 }
 0x4fe   : > { %p2669_p11 = pnand %p2668_p10, %p3260_p12 }
 0x4ff   : > { %p2674_p7 = por %p2673_p9, %p2672_p5 }
 0x500   : > { %p2670_p3 = pneg %p2669_p11 }
 0x501   : > { %p2676_p1 = por %p2675_p4, %p2674_p7 }
 0x503   : > { %p2677_p13 = pnand %p2676_p1, %p2670_p3 }
 0x505   : > { %2680 = shalt.err (!%p2677_p13)
}
 0x506   : > { %s2743_s23 = smov 128   ;;  %s2744_s16 = smov 8  }
 0x507   : > { %2399 = dma.vmem_to_hbm [thread:$0]  (%p3260_p12), %s3183_s18, 256, %s3188_s13, %s1489_s30, %s2743_s23, %s2743_s23, %s2744_s16  }
 0x508 PF: > { %s1517_s11 = sand.u32 1, %s2719_s24   ;;  %p3261_p0 = scmp.ne.s32.totalorder %s3250_s17, 0 }
 0x509   : > { %p3262_p2 = scmp.ge.s32.totalorder %s2731_s27, 2  ;;  %s1518_s8 = scalar_lea.sflag [#allocation6], %s1517_s11 }
 0x50b   : > { %p2422_p8 = pnand %p3262_p2, %p3261_p0 }
 0x50d   : > { %2714 = dma.done.wait (!%p2422_p8), %s1518_s8, 256  }
 0x50e   : > { %2716 = vsyncadd (!%p2422_p8), %s1518_s8, 4294967040  ;;  %p23_p6 = scmp.ge.s32.totalorder %s2958_s19, 4   ;;  %s3263_s24 = smov %s2723_s25 }
 0x50f   : > { %s3264_s25 = smov %s2727_s26  ;;  %s3265_s26 = smov %s2970_s12 }
 0x510   : > { %s3266_s27 = smov %s2958_s19  ;;  %25 = sbr.rel (!%p23_p6) target bundleno = 8 (0x8), region = 120 }
 0x517   :  { %1523 = vsyncpa [#allocation5], 1 }
 0x518   :  { %1525 = vsyncpa [#allocation5 + $0x1], 1 }
 0x519   :  { %1526 = vsyncpa [#allocation8], 1 }
 0x51a   :  { %1527 = vsyncpa [#allocation11], 1 }
 0x51b   :  { %1528 = vsyncpa [#allocation14], 1 }
 0x51c   :  { %1529 = vsyncpa [#allocation6], 1 }
 0x51d   :  { %1531 = vsyncpa [#allocation6 + $0x1], 1 }

</bundles_post_ra>
